<compile_context>
chip_gen: v6e
topology: v6e:2x2x1
jax: 0.10.0
libtpu: 0.0.40
codegen_flags: <defaults>
</compile_context>

<pallas_src>
import functools

import jax
import jax.numpy as jnp
from jax.experimental import pallas as pl
from jax.experimental.pallas import tpu as pltpu

D_MODEL = 32
N_HEAD = 4
D_K = D_MODEL // N_HEAD
EPS = 1e-5  # PyTorch LayerNorm default


# ----------------------------- in-kernel helpers ---------------------------- #

def _add_layernorm(x, res, gamma, beta):
    """LayerNorm(x + res) over the last dim.  x/res: [S, D]."""
    y = x + res
    mean = jnp.mean(y, axis=-1, keepdims=True)
    var = jnp.mean((y - mean) ** 2, axis=-1, keepdims=True)
    return (y - mean) * jax.lax.rsqrt(var + EPS) * gamma + beta


def _mha(x_q, x_kv, masked, wqkv, bqkv, wo, bo, gamma, beta, *, self_attn):
    """Multi-head attention + Add&LayerNorm, fully in VMEM.

    x_q/x_kv: [S, D]; masked: [S, S] bool (True == masked position);
    wqkv: [D, 3D] ([:, :D]=Q, [:, D:2D]=K, [:, 2D:]=V); bqkv: [1, 3D].
    """
    if self_attn:
        # Q = K = V source -> one fused QKV projection matmul.
        qkv = jnp.dot(x_q, wqkv, preferred_element_type=jnp.float32) + bqkv
        q = qkv[:, :D_MODEL]
        k = qkv[:, D_MODEL:2 * D_MODEL]
        v = qkv[:, 2 * D_MODEL:]
    else:
        q = (jnp.dot(x_q, wqkv[:, :D_MODEL], preferred_element_type=jnp.float32)
             + bqkv[:, :D_MODEL])
        kv = (jnp.dot(x_kv, wqkv[:, D_MODEL:], preferred_element_type=jnp.float32)
              + bqkv[:, D_MODEL:])
        k = kv[:, :D_MODEL]
        v = kv[:, D_MODEL:]

    # scale Q once instead of scaling every per-head score tile
    q = q * (1.0 / jnp.sqrt(jnp.float32(D_K)))

    parts = []
    for h in range(N_HEAD):  # heads batched in-kernel (static unroll, H=4)
        sl = slice(h * D_K, (h + 1) * D_K)
        qh, kh, vh = q[:, sl], k[:, sl], v[:, sl]
        # scores = qh @ kh^T (contract over dk, no explicit .T)
        s = jax.lax.dot_general(
            qh, kh, (((1,), (1,)), ((), ())), preferred_element_type=jnp.float32
        )
        # exact torch masked_fill(mask, -1e9) semantics
        s = jnp.where(masked, jnp.float32(-1e9), s)
        # numerically stable softmax over keys
        s = s - jnp.max(s, axis=-1, keepdims=True)
        p = jnp.exp(s)
        p = p * pl.reciprocal(jnp.sum(p, axis=-1, keepdims=True), approx=True)
        parts.append(jnp.dot(p, vh, preferred_element_type=jnp.float32))
    ctx = jnp.concatenate(parts, axis=-1)  # merge heads -> [S, D]

    out = jnp.dot(ctx, wo, preferred_element_type=jnp.float32) + bo
    return _add_layernorm(out, x_q, gamma, beta)


def _ffn(x, w1, b1, w2, b2, gamma, beta):
    """Linear -> (Dropout: identity in eval) -> ReLU -> Linear -> Add&LN."""
    h = jnp.dot(x, w1, preferred_element_type=jnp.float32) + b1
    h = jnp.maximum(h, 0.0)
    y = jnp.dot(h, w2, preferred_element_type=jnp.float32) + b2
    return _add_layernorm(y, x, gamma, beta)


# ------------------------------- fused kernel ------------------------------- #

def _decoder_layer_kernel(
    enc_ref, dec_ref, attn_mask_ref, self_mask_ref,
    wqkv1_ref, bqkv1_ref, wo1_ref, bo1_ref, g1_ref, be1_ref,
    wqkv2_ref, bqkv2_ref, wo2_ref, bo2_ref, g2_ref, be2_ref,
    w1_ref, b1_ref, w2_ref, b2_ref, g3_ref, be3_ref,
    o_ref,
):
    enc = enc_ref[0]   # [S, D]
    dec = dec_ref[0]   # [S, D]
    self_masked = self_mask_ref[0] != 0   # [S, S] bool
    cross_masked = attn_mask_ref[0] != 0  # [S, S] bool

    # masked self-attention (Q=K=V=dec_input)  -> fused QKV matmul
    out = _mha(dec, dec, self_masked,
               wqkv1_ref[...], bqkv1_ref[...], wo1_ref[...], bo1_ref[...],
               g1_ref[...], be1_ref[...], self_attn=True)
    # cross-attention (Q=prev output, K=V=enc_input)
    out = _mha(out, enc, cross_masked,
               wqkv2_ref[...], bqkv2_ref[...], wo2_ref[...], bo2_ref[...],
               g2_ref[...], be2_ref[...], self_attn=False)
    # feed-forward
    out = _ffn(out, w1_ref[...], b1_ref[...], w2_ref[...], b2_ref[...],
               g3_ref[...], be3_ref[...])

    o_ref[0] = out


# ------------------------------ module wrapper ------------------------------ #

def decoder_layer(enc_input, dec_input, attn_mask, self_mask, params):
    """enc_input/dec_input: [B, S, D]; masks: [B, S, S] int (nonzero == masked)."""
    B, S, D = dec_input.shape
    assert D == D_MODEL

    attn_mask = attn_mask.astype(jnp.int32)
    self_mask = self_mask.astype(jnp.int32)

    p1, p2, pf = params["dec_mask_attn"], params["dec_attn"], params["ffn"]
    row = lambda v: v.reshape(1, -1)
    weight_args = (
        p1["wqkv"], row(p1["bqkv"]), p1["wo"], row(p1["bo"]), row(p1["ln_g"]), row(p1["ln_b"]),
        p2["wqkv"], row(p2["bqkv"]), p2["wo"], row(p2["bo"]), row(p2["ln_g"]), row(p2["ln_b"]),
        pf["w1"], row(pf["b1"]), pf["w2"], row(pf["b2"]), row(pf["ln_g"]), row(pf["ln_b"]),
    )

    act_specs = [
        pl.BlockSpec((1, S, D), lambda b: (b, 0, 0)),   # enc_input
        pl.BlockSpec((1, S, D), lambda b: (b, 0, 0)),   # dec_input
        pl.BlockSpec((1, S, S), lambda b: (b, 0, 0)),   # cross-attn mask (int32)
        pl.BlockSpec((1, S, S), lambda b: (b, 0, 0)),   # self-attn mask (int32)
    ]
    # every weight/bias is 2-D and fully resident (same block every grid step)
    weight_specs = [pl.BlockSpec(w.shape, lambda b: (0, 0)) for w in weight_args]

    return pl.pallas_call(
        _decoder_layer_kernel,
        out_shape=jax.ShapeDtypeStruct((B, S, D), jnp.float32),
        grid=(B,),
        in_specs=act_specs + weight_specs,
        out_specs=pl.BlockSpec((1, S, D), lambda b: (b, 0, 0)),
        compiler_params=pltpu.CompilerParams(
            dimension_semantics=("parallel",),   # lets v7x shard batch over 2 TCs
        ),
    )(enc_input, dec_input, attn_mask, self_mask, *weight_args)


# --------------------------- pure-JAX reference ------------------------------ #

def _reference(enc, dec, attn_mask, self_mask, params):
    def ln(x, g, b):
        m = x.mean(-1, keepdims=True)
        v = ((x - m) ** 2).mean(-1, keepdims=True)
        return (x - m) / jnp.sqrt(v + EPS) * g + b

    def mha(xq, xkv, mask, p):
        q = xq @ p["wqkv"][:, :D_MODEL] + p["bqkv"][:D_MODEL]
        k = xkv @ p["wqkv"][:, D_MODEL:2 * D_MODEL] + p["bqkv"][D_MODEL:2 * D_MODEL]
        v = xkv @ p["wqkv"][:, 2 * D_MODEL:] + p["bqkv"][2 * D_MODEL:]
        B, S, _ = q.shape
        qh = q.reshape(B, S, N_HEAD, D_K).transpose(0, 2, 1, 3)
        kh = k.reshape(B, S, N_HEAD, D_K).transpose(0, 2, 1, 3)
        vh = v.reshape(B, S, N_HEAD, D_K).transpose(0, 2, 1, 3)
        s = jnp.einsum("bhqd,bhkd->bhqk", qh, kh) / jnp.sqrt(jnp.float32(D_K))
        s = jnp.where(mask[:, None] != 0, jnp.float32(-1e9), s)
        w = jax.nn.softmax(s, axis=-1)
        ctx = jnp.einsum("bhqk,bhkd->bhqd", w, vh).transpose(0, 2, 1, 3).reshape(B, S, -1)
        out = ctx @ p["wo"] + p["bo"]
        return ln(out + xq, p["ln_g"], p["ln_b"])

    def ffn(x, p):
        h = jnp.maximum(x @ p["w1"] + p["b1"], 0.0)
        y = h @ p["w2"] + p["b2"]
        return ln(y + x, p["ln_g"], p["ln_b"])

    o = mha(dec, dec, self_mask, params["dec_mask_attn"])
    o = mha(o, enc, attn_mask, params["dec_attn"])
    return ffn(o, params["ffn"])


# ------------------------------- param init --------------------------------- #

def _init_linear(key, din, dout, scale=0.05):
    k1, k2 = jax.random.split(key)
    w = jax.random.normal(k1, (din, dout), jnp.float32) * scale
    b = jax.random.normal(k2, (dout,), jnp.float32) * scale
    return w, b


def init_mha_params(key, d_model):
    ks = jax.random.split(key, 4)
    wq, bq = _init_linear(ks[0], d_model, d_model)
    wk, bk = _init_linear(ks[1], d_model, d_model)
    wv, bv = _init_linear(ks[2], d_model, d_model)
    wo, bo = _init_linear(ks[3], d_model, d_model)
    return dict(
        wqkv=jnp.concatenate([wq, wk, wv], axis=1),   # [D, 3D]
        bqkv=jnp.concatenate([bq, bk, bv], axis=0),   # [3D]
        wo=wo, bo=bo,
        ln_g=jnp.ones((d_model,), jnp.float32),
        ln_b=jnp.zeros((d_model,), jnp.float32),
    )


def init_ffn_params(key, d_model):
    k1, k2 = jax.random.split(key)
    w1, b1 = _init_linear(k1, d_model, d_model)
    w2, b2 = _init_linear(k2, d_model, d_model)
    return dict(w1=w1, b1=b1, w2=w2, b2=b2,
                ln_g=jnp.ones((d_model,), jnp.float32),
                ln_b=jnp.zeros((d_model,), jnp.float32))


def init_decoder_layer_params(key, d_model):
    k1, k2, k3 = jax.random.split(key, 3)
    return dict(dec_mask_attn=init_mha_params(k1, d_model),
                dec_attn=init_mha_params(k2, d_model),
                ffn=init_ffn_params(k3, d_model))


# ---------------------------------- main ------------------------------------ #

if __name__ == "__main__":
    B, S = 2, 8

    key = jax.random.PRNGKey(0)
    kp, ke, kd = jax.random.split(key, 3)

    params = init_decoder_layer_params(kp, D_MODEL)
    enc_input = jax.random.normal(ke, (B, S, D_MODEL), jnp.float32)
    dec_input = jax.random.normal(kd, (B, S, D_MODEL), jnp.float32)

    # self mask: causal (strictly upper-triangular == masked)
    causal = jnp.triu(jnp.ones((S, S), jnp.int32), k=1)
    self_mask = jnp.broadcast_to(causal, (B, S, S)).astype(jnp.int32)
    # cross-attention mask: no positions masked
    attn_mask = jnp.zeros((B, S, S), jnp.int32)

    fwd = jax.jit(functools.partial(decoder_layer, params=params))
    out = fwd(enc_input, dec_input, attn_mask, self_mask)
    out = jax.block_until_ready(out)

    ref = _reference(enc_input, dec_input, attn_mask, self_mask, params)

    assert out.shape == (B, S, D_MODEL)
    assert bool(jnp.all(jnp.isfinite(out)))
    assert bool(jnp.allclose(out, ref, atol=1e-2, rtol=1e-2)), \
        float(jnp.max(jnp.abs(out - ref)))
    print("KERNEL_OK")
</pallas_src>

<mosaic_0001>
module attributes {stable_mosaic.version = 11 : i64} {
  func.func @_decoder_layer_kernel(%arg0: i32, %arg1: memref<1x8x32xf32, #tpu.memory_space<vmem>>, %arg2: memref<1x8x32xf32, #tpu.memory_space<vmem>>, %arg3: memref<1x8x8xi32, #tpu.memory_space<vmem>>, %arg4: memref<1x8x8xi32, #tpu.memory_space<vmem>>, %arg5: memref<32x96xf32, #tpu.memory_space<vmem>>, %arg6: memref<1x96xf32, #tpu.memory_space<vmem>>, %arg7: memref<32x32xf32, #tpu.memory_space<vmem>>, %arg8: memref<1x32xf32, #tpu.memory_space<vmem>>, %arg9: memref<1x32xf32, #tpu.memory_space<vmem>>, %arg10: memref<1x32xf32, #tpu.memory_space<vmem>>, %arg11: memref<32x96xf32, #tpu.memory_space<vmem>>, %arg12: memref<1x96xf32, #tpu.memory_space<vmem>>, %arg13: memref<32x32xf32, #tpu.memory_space<vmem>>, %arg14: memref<1x32xf32, #tpu.memory_space<vmem>>, %arg15: memref<1x32xf32, #tpu.memory_space<vmem>>, %arg16: memref<1x32xf32, #tpu.memory_space<vmem>>, %arg17: memref<32x32xf32, #tpu.memory_space<vmem>>, %arg18: memref<1x32xf32, #tpu.memory_space<vmem>>, %arg19: memref<32x32xf32, #tpu.memory_space<vmem>>, %arg20: memref<1x32xf32, #tpu.memory_space<vmem>>, %arg21: memref<1x32xf32, #tpu.memory_space<vmem>>, %arg22: memref<1x32xf32, #tpu.memory_space<vmem>>, %arg23: memref<1x8x32xf32, #tpu.memory_space<vmem>>) attributes {dimension_semantics = [#tpu.dimension_semantics<parallel>], iteration_bounds = array<i64: 2>, scalar_prefetch = 0 : i64, scratch_operands = 0 : i64, tpu.core_type = #tpu.core_type<tc>, window_params = [{transform_indices = @transform_0, window_bounds = array<i64: 1, 8, 32>}, {transform_indices = @transform_1, window_bounds = array<i64: 1, 8, 32>}, {transform_indices = @transform_2, window_bounds = array<i64: 1, 8, 8>}, {transform_indices = @transform_3, window_bounds = array<i64: 1, 8, 8>}, {pipeline_mode = #tpu.pipeline_mode<synchronous>, transform_indices = @transform_4, window_bounds = array<i64: 32, 96>}, {pipeline_mode = #tpu.pipeline_mode<synchronous>, transform_indices = @transform_5, window_bounds = array<i64: 1, 96>}, {pipeline_mode = #tpu.pipeline_mode<synchronous>, transform_indices = @transform_6, window_bounds = array<i64: 32, 32>}, {pipeline_mode = #tpu.pipeline_mode<synchronous>, transform_indices = @transform_7, window_bounds = array<i64: 1, 32>}, {pipeline_mode = #tpu.pipeline_mode<synchronous>, transform_indices = @transform_8, window_bounds = array<i64: 1, 32>}, {pipeline_mode = #tpu.pipeline_mode<synchronous>, transform_indices = @transform_9, window_bounds = array<i64: 1, 32>}, {pipeline_mode = #tpu.pipeline_mode<synchronous>, transform_indices = @transform_10, window_bounds = array<i64: 32, 96>}, {pipeline_mode = #tpu.pipeline_mode<synchronous>, transform_indices = @transform_11, window_bounds = array<i64: 1, 96>}, {pipeline_mode = #tpu.pipeline_mode<synchronous>, transform_indices = @transform_12, window_bounds = array<i64: 32, 32>}, {pipeline_mode = #tpu.pipeline_mode<synchronous>, transform_indices = @transform_13, window_bounds = array<i64: 1, 32>}, {pipeline_mode = #tpu.pipeline_mode<synchronous>, transform_indices = @transform_14, window_bounds = array<i64: 1, 32>}, {pipeline_mode = #tpu.pipeline_mode<synchronous>, transform_indices = @transform_15, window_bounds = array<i64: 1, 32>}, {pipeline_mode = #tpu.pipeline_mode<synchronous>, transform_indices = @transform_16, window_bounds = array<i64: 32, 32>}, {pipeline_mode = #tpu.pipeline_mode<synchronous>, transform_indices = @transform_17, window_bounds = array<i64: 1, 32>}, {pipeline_mode = #tpu.pipeline_mode<synchronous>, transform_indices = @transform_18, window_bounds = array<i64: 32, 32>}, {pipeline_mode = #tpu.pipeline_mode<synchronous>, transform_indices = @transform_19, window_bounds = array<i64: 1, 32>}, {pipeline_mode = #tpu.pipeline_mode<synchronous>, transform_indices = @transform_20, window_bounds = array<i64: 1, 32>}, {pipeline_mode = #tpu.pipeline_mode<synchronous>, transform_indices = @transform_21, window_bounds = array<i64: 1, 32>}, {transform_indices = @transform_22, window_bounds = array<i64: 1, 8, 32>}]} {
    %c0 = arith.constant 0 : index
    %c0_0 = arith.constant 0 : index
    %c0_1 = arith.constant 0 : index
    %0 = vector.load %arg1[%c0, %c0_0, %c0_1] : memref<1x8x32xf32, #tpu.memory_space<vmem>>, vector<1x8x32xf32>
    %1 = vector.shape_cast %0 : vector<1x8x32xf32> to vector<8x32xf32>
    %c0_2 = arith.constant 0 : index
    %c0_3 = arith.constant 0 : index
    %c0_4 = arith.constant 0 : index
    %2 = vector.load %arg2[%c0_2, %c0_3, %c0_4] : memref<1x8x32xf32, #tpu.memory_space<vmem>>, vector<1x8x32xf32>
    %3 = vector.shape_cast %2 : vector<1x8x32xf32> to vector<8x32xf32>
    %c0_5 = arith.constant 0 : index
    %c0_6 = arith.constant 0 : index
    %c0_7 = arith.constant 0 : index
    %4 = vector.load %arg4[%c0_5, %c0_6, %c0_7] : memref<1x8x8xi32, #tpu.memory_space<vmem>>, vector<1x8x8xi32>
    %5 = vector.shape_cast %4 : vector<1x8x8xi32> to vector<8x8xi32>
    %c0_i32 = arith.constant 0 : i32
    %6 = vector.broadcast %c0_i32 : i32 to vector<8x8xi32>
    %7 = arith.cmpi ne, %5, %6 : vector<8x8xi32>
    %c0_8 = arith.constant 0 : index
    %c0_9 = arith.constant 0 : index
    %c0_10 = arith.constant 0 : index
    %8 = vector.load %arg3[%c0_8, %c0_9, %c0_10] : memref<1x8x8xi32, #tpu.memory_space<vmem>>, vector<1x8x8xi32>
    %9 = vector.shape_cast %8 : vector<1x8x8xi32> to vector<8x8xi32>
    %c0_i32_11 = arith.constant 0 : i32
    %10 = vector.broadcast %c0_i32_11 : i32 to vector<8x8xi32>
    %11 = arith.cmpi ne, %9, %10 : vector<8x8xi32>
    %c0_12 = arith.constant 0 : index
    %c0_13 = arith.constant 0 : index
    %12 = vector.load %arg5[%c0_12, %c0_13] : memref<32x96xf32, #tpu.memory_space<vmem>>, vector<32x96xf32>
    %c0_14 = arith.constant 0 : index
    %c0_15 = arith.constant 0 : index
    %13 = vector.load %arg6[%c0_14, %c0_15] : memref<1x96xf32, #tpu.memory_space<vmem>>, vector<1x96xf32>
    %c0_16 = arith.constant 0 : index
    %c0_17 = arith.constant 0 : index
    %14 = vector.load %arg7[%c0_16, %c0_17] : memref<32x32xf32, #tpu.memory_space<vmem>>, vector<32x32xf32>
    %c0_18 = arith.constant 0 : index
    %c0_19 = arith.constant 0 : index
    %15 = vector.load %arg8[%c0_18, %c0_19] : memref<1x32xf32, #tpu.memory_space<vmem>>, vector<1x32xf32>
    %c0_20 = arith.constant 0 : index
    %c0_21 = arith.constant 0 : index
    %16 = vector.load %arg9[%c0_20, %c0_21] : memref<1x32xf32, #tpu.memory_space<vmem>>, vector<1x32xf32>
    %c0_22 = arith.constant 0 : index
    %c0_23 = arith.constant 0 : index
    %17 = vector.load %arg10[%c0_22, %c0_23] : memref<1x32xf32, #tpu.memory_space<vmem>>, vector<1x32xf32>
    %cst = arith.constant dense<0.000000e+00> : vector<8x96xf32>
    %18 = tpu.matmul %3, %12, %cst {dimension_numbers = #tpu.dot_dimension_numbers<[1], [0], [0], [1], [0, 0, 1, 1], [], []>} : vector<8x32xf32>, vector<32x96xf32>, vector<8x96xf32> -> vector<8x96xf32>
    %19 = vector.broadcast %13 : vector<1x96xf32> to vector<8x96xf32>
    %20 = arith.addf %18, %19 : vector<8x96xf32>
    %21 = vector.extract_strided_slice %20 {offsets = [0, 0], sizes = [8, 32], strides = [1, 1]} : vector<8x96xf32> to vector<8x32xf32>
    %22 = vector.extract_strided_slice %20 {offsets = [0, 32], sizes = [8, 32], strides = [1, 1]} : vector<8x96xf32> to vector<8x32xf32>
    %23 = vector.extract_strided_slice %20 {offsets = [0, 64], sizes = [8, 32], strides = [1, 1]} : vector<8x96xf32> to vector<8x32xf32>
    %cst_24 = arith.constant 8.000000e+00 : f32
    %24 = math.sqrt %cst_24 : f32
    %cst_25 = arith.constant 1.000000e+00 : f32
    %25 = arith.divf %cst_25, %24 : f32
    %26 = vector.broadcast %25 : f32 to vector<8x32xf32>
    %27 = arith.mulf %21, %26 : vector<8x32xf32>
    %28 = vector.extract_strided_slice %27 {offsets = [0, 0], sizes = [8, 8], strides = [1, 1]} : vector<8x32xf32> to vector<8x8xf32>
    %29 = vector.extract_strided_slice %22 {offsets = [0, 0], sizes = [8, 8], strides = [1, 1]} : vector<8x32xf32> to vector<8x8xf32>
    %30 = vector.extract_strided_slice %23 {offsets = [0, 0], sizes = [8, 8], strides = [1, 1]} : vector<8x32xf32> to vector<8x8xf32>
    %cst_26 = arith.constant dense<0.000000e+00> : vector<8x8xf32>
    %31 = tpu.matmul %28, %29, %cst_26 {dimension_numbers = #tpu.dot_dimension_numbers<[1], [1], [0], [0], [0, 0, 1, 0], [], []>} : vector<8x8xf32>, vector<8x8xf32>, vector<8x8xf32> -> vector<8x8xf32>
    %cst_27 = arith.constant -1.000000e+09 : f32
    %32 = vector.broadcast %cst_27 : f32 to vector<8x8xf32>
    %33 = arith.select %7, %32, %31 : vector<8x8xi1>, vector<8x8xf32>
    %cst_28 = arith.constant dense<0xFF800000> : vector<8xf32>
    %34 = vector.multi_reduction <maximumf>, %33, %cst_28 [1] : vector<8x8xf32> to vector<8xf32>
    %35 = vector.shape_cast %34 : vector<8xf32> to vector<8x1xf32>
    %36 = vector.broadcast %35 : vector<8x1xf32> to vector<8x8xf32>
    %37 = arith.subf %33, %36 : vector<8x8xf32>
    %38 = math.exp %37 : vector<8x8xf32>
    %cst_29 = arith.constant dense<0.000000e+00> : vector<8xf32>
    %39 = vector.multi_reduction <add>, %38, %cst_29 [1] : vector<8x8xf32> to vector<8xf32>
    %40 = vector.shape_cast %39 : vector<8xf32> to vector<8x1xf32>
    %41 = tpu.reciprocal %40 {approx = true} : vector<8x1xf32> -> vector<8x1xf32>
    %42 = vector.broadcast %41 : vector<8x1xf32> to vector<8x8xf32>
    %43 = arith.mulf %38, %42 : vector<8x8xf32>
    %cst_30 = arith.constant dense<0.000000e+00> : vector<8x8xf32>
    %44 = tpu.matmul %43, %30, %cst_30 {dimension_numbers = #tpu.dot_dimension_numbers<[1], [0], [0], [1], [0, 0, 1, 1], [], []>} : vector<8x8xf32>, vector<8x8xf32>, vector<8x8xf32> -> vector<8x8xf32>
    %45 = vector.extract_strided_slice %27 {offsets = [0, 8], sizes = [8, 8], strides = [1, 1]} : vector<8x32xf32> to vector<8x8xf32>
    %46 = vector.extract_strided_slice %22 {offsets = [0, 8], sizes = [8, 8], strides = [1, 1]} : vector<8x32xf32> to vector<8x8xf32>
    %47 = vector.extract_strided_slice %23 {offsets = [0, 8], sizes = [8, 8], strides = [1, 1]} : vector<8x32xf32> to vector<8x8xf32>
    %cst_31 = arith.constant dense<0.000000e+00> : vector<8x8xf32>
    %48 = tpu.matmul %45, %46, %cst_31 {dimension_numbers = #tpu.dot_dimension_numbers<[1], [1], [0], [0], [0, 0, 1, 0], [], []>} : vector<8x8xf32>, vector<8x8xf32>, vector<8x8xf32> -> vector<8x8xf32>
    %cst_32 = arith.constant -1.000000e+09 : f32
    %49 = vector.broadcast %cst_32 : f32 to vector<8x8xf32>
    %50 = arith.select %7, %49, %48 : vector<8x8xi1>, vector<8x8xf32>
    %cst_33 = arith.constant dense<0xFF800000> : vector<8xf32>
    %51 = vector.multi_reduction <maximumf>, %50, %cst_33 [1] : vector<8x8xf32> to vector<8xf32>
    %52 = vector.shape_cast %51 : vector<8xf32> to vector<8x1xf32>
    %53 = vector.broadcast %52 : vector<8x1xf32> to vector<8x8xf32>
    %54 = arith.subf %50, %53 : vector<8x8xf32>
    %55 = math.exp %54 : vector<8x8xf32>
    %cst_34 = arith.constant dense<0.000000e+00> : vector<8xf32>
    %56 = vector.multi_reduction <add>, %55, %cst_34 [1] : vector<8x8xf32> to vector<8xf32>
    %57 = vector.shape_cast %56 : vector<8xf32> to vector<8x1xf32>
    %58 = tpu.reciprocal %57 {approx = true} : vector<8x1xf32> -> vector<8x1xf32>
    %59 = vector.broadcast %58 : vector<8x1xf32> to vector<8x8xf32>
    %60 = arith.mulf %55, %59 : vector<8x8xf32>
    %cst_35 = arith.constant dense<0.000000e+00> : vector<8x8xf32>
    %61 = tpu.matmul %60, %47, %cst_35 {dimension_numbers = #tpu.dot_dimension_numbers<[1], [0], [0], [1], [0, 0, 1, 1], [], []>} : vector<8x8xf32>, vector<8x8xf32>, vector<8x8xf32> -> vector<8x8xf32>
    %62 = vector.extract_strided_slice %27 {offsets = [0, 16], sizes = [8, 8], strides = [1, 1]} : vector<8x32xf32> to vector<8x8xf32>
    %63 = vector.extract_strided_slice %22 {offsets = [0, 16], sizes = [8, 8], strides = [1, 1]} : vector<8x32xf32> to vector<8x8xf32>
    %64 = vector.extract_strided_slice %23 {offsets = [0, 16], sizes = [8, 8], strides = [1, 1]} : vector<8x32xf32> to vector<8x8xf32>
    %cst_36 = arith.constant dense<0.000000e+00> : vector<8x8xf32>
    %65 = tpu.matmul %62, %63, %cst_36 {dimension_numbers = #tpu.dot_dimension_numbers<[1], [1], [0], [0], [0, 0, 1, 0], [], []>} : vector<8x8xf32>, vector<8x8xf32>, vector<8x8xf32> -> vector<8x8xf32>
    %cst_37 = arith.constant -1.000000e+09 : f32
    %66 = vector.broadcast %cst_37 : f32 to vector<8x8xf32>
    %67 = arith.select %7, %66, %65 : vector<8x8xi1>, vector<8x8xf32>
    %cst_38 = arith.constant dense<0xFF800000> : vector<8xf32>
    %68 = vector.multi_reduction <maximumf>, %67, %cst_38 [1] : vector<8x8xf32> to vector<8xf32>
    %69 = vector.shape_cast %68 : vector<8xf32> to vector<8x1xf32>
    %70 = vector.broadcast %69 : vector<8x1xf32> to vector<8x8xf32>
    %71 = arith.subf %67, %70 : vector<8x8xf32>
    %72 = math.exp %71 : vector<8x8xf32>
    %cst_39 = arith.constant dense<0.000000e+00> : vector<8xf32>
    %73 = vector.multi_reduction <add>, %72, %cst_39 [1] : vector<8x8xf32> to vector<8xf32>
    %74 = vector.shape_cast %73 : vector<8xf32> to vector<8x1xf32>
    %75 = tpu.reciprocal %74 {approx = true} : vector<8x1xf32> -> vector<8x1xf32>
    %76 = vector.broadcast %75 : vector<8x1xf32> to vector<8x8xf32>
    %77 = arith.mulf %72, %76 : vector<8x8xf32>
    %cst_40 = arith.constant dense<0.000000e+00> : vector<8x8xf32>
    %78 = tpu.matmul %77, %64, %cst_40 {dimension_numbers = #tpu.dot_dimension_numbers<[1], [0], [0], [1], [0, 0, 1, 1], [], []>} : vector<8x8xf32>, vector<8x8xf32>, vector<8x8xf32> -> vector<8x8xf32>
    %79 = vector.extract_strided_slice %27 {offsets = [0, 24], sizes = [8, 8], strides = [1, 1]} : vector<8x32xf32> to vector<8x8xf32>
    %80 = vector.extract_strided_slice %22 {offsets = [0, 24], sizes = [8, 8], strides = [1, 1]} : vector<8x32xf32> to vector<8x8xf32>
    %81 = vector.extract_strided_slice %23 {offsets = [0, 24], sizes = [8, 8], strides = [1, 1]} : vector<8x32xf32> to vector<8x8xf32>
    %cst_41 = arith.constant dense<0.000000e+00> : vector<8x8xf32>
    %82 = tpu.matmul %79, %80, %cst_41 {dimension_numbers = #tpu.dot_dimension_numbers<[1], [1], [0], [0], [0, 0, 1, 0], [], []>} : vector<8x8xf32>, vector<8x8xf32>, vector<8x8xf32> -> vector<8x8xf32>
    %cst_42 = arith.constant -1.000000e+09 : f32
    %83 = vector.broadcast %cst_42 : f32 to vector<8x8xf32>
    %84 = arith.select %7, %83, %82 : vector<8x8xi1>, vector<8x8xf32>
    %cst_43 = arith.constant dense<0xFF800000> : vector<8xf32>
    %85 = vector.multi_reduction <maximumf>, %84, %cst_43 [1] : vector<8x8xf32> to vector<8xf32>
    %86 = vector.shape_cast %85 : vector<8xf32> to vector<8x1xf32>
    %87 = vector.broadcast %86 : vector<8x1xf32> to vector<8x8xf32>
    %88 = arith.subf %84, %87 : vector<8x8xf32>
    %89 = math.exp %88 : vector<8x8xf32>
    %cst_44 = arith.constant dense<0.000000e+00> : vector<8xf32>
    %90 = vector.multi_reduction <add>, %89, %cst_44 [1] : vector<8x8xf32> to vector<8xf32>
    %91 = vector.shape_cast %90 : vector<8xf32> to vector<8x1xf32>
    %92 = tpu.reciprocal %91 {approx = true} : vector<8x1xf32> -> vector<8x1xf32>
    %93 = vector.broadcast %92 : vector<8x1xf32> to vector<8x8xf32>
    %94 = arith.mulf %89, %93 : vector<8x8xf32>
    %cst_45 = arith.constant dense<0.000000e+00> : vector<8x8xf32>
    %95 = tpu.matmul %94, %81, %cst_45 {dimension_numbers = #tpu.dot_dimension_numbers<[1], [0], [0], [1], [0, 0, 1, 1], [], []>} : vector<8x8xf32>, vector<8x8xf32>, vector<8x8xf32> -> vector<8x8xf32>
    %96 = tpu.concatenate %44, %61, %78, %95 in 1 : vector<8x8xf32>, vector<8x8xf32>, vector<8x8xf32>, vector<8x8xf32> -> vector<8x32xf32>
    %cst_46 = arith.constant dense<0.000000e+00> : vector<8x32xf32>
    %97 = tpu.matmul %96, %14, %cst_46 {dimension_numbers = #tpu.dot_dimension_numbers<[1], [0], [0], [1], [0, 0, 1, 1], [], []>} : vector<8x32xf32>, vector<32x32xf32>, vector<8x32xf32> -> vector<8x32xf32>
    %98 = vector.broadcast %15 : vector<1x32xf32> to vector<8x32xf32>
    %99 = arith.addf %97, %98 : vector<8x32xf32>
    %100 = arith.addf %99, %3 : vector<8x32xf32>
    %cst_47 = arith.constant dense<0.000000e+00> : vector<8xf32>
    %101 = vector.multi_reduction <add>, %100, %cst_47 [1] : vector<8x32xf32> to vector<8xf32>
    %102 = vector.shape_cast %101 : vector<8xf32> to vector<8x1xf32>
    %cst_48 = arith.constant 3.200000e+01 : f32
    %103 = vector.broadcast %cst_48 : f32 to vector<8x1xf32>
    %104 = arith.divf %102, %103 : vector<8x1xf32>
    %105 = vector.broadcast %104 : vector<8x1xf32> to vector<8x32xf32>
    %106 = arith.subf %100, %105 : vector<8x32xf32>
    %107 = arith.mulf %106, %106 : vector<8x32xf32>
    %cst_49 = arith.constant dense<0.000000e+00> : vector<8xf32>
    %108 = vector.multi_reduction <add>, %107, %cst_49 [1] : vector<8x32xf32> to vector<8xf32>
    %109 = vector.shape_cast %108 : vector<8xf32> to vector<8x1xf32>
    %cst_50 = arith.constant 3.200000e+01 : f32
    %110 = vector.broadcast %cst_50 : f32 to vector<8x1xf32>
    %111 = arith.divf %109, %110 : vector<8x1xf32>
    %112 = vector.broadcast %104 : vector<8x1xf32> to vector<8x32xf32>
    %113 = arith.subf %100, %112 : vector<8x32xf32>
    %cst_51 = arith.constant 9.99999974E-6 : f32
    %114 = vector.broadcast %cst_51 : f32 to vector<8x1xf32>
    %115 = arith.addf %111, %114 : vector<8x1xf32>
    %116 = math.rsqrt %115 : vector<8x1xf32>
    %117 = vector.broadcast %116 : vector<8x1xf32> to vector<8x32xf32>
    %118 = arith.mulf %113, %117 : vector<8x32xf32>
    %119 = vector.broadcast %16 : vector<1x32xf32> to vector<8x32xf32>
    %120 = arith.mulf %118, %119 : vector<8x32xf32>
    %121 = vector.broadcast %17 : vector<1x32xf32> to vector<8x32xf32>
    %122 = arith.addf %120, %121 : vector<8x32xf32>
    %c0_52 = arith.constant 0 : index
    %c0_53 = arith.constant 0 : index
    %123 = vector.load %arg11[%c0_52, %c0_53] : memref<32x96xf32, #tpu.memory_space<vmem>>, vector<32x96xf32>
    %c0_54 = arith.constant 0 : index
    %c0_55 = arith.constant 0 : index
    %124 = vector.load %arg12[%c0_54, %c0_55] : memref<1x96xf32, #tpu.memory_space<vmem>>, vector<1x96xf32>
    %c0_56 = arith.constant 0 : index
    %c0_57 = arith.constant 0 : index
    %125 = vector.load %arg13[%c0_56, %c0_57] : memref<32x32xf32, #tpu.memory_space<vmem>>, vector<32x32xf32>
    %c0_58 = arith.constant 0 : index
    %c0_59 = arith.constant 0 : index
    %126 = vector.load %arg14[%c0_58, %c0_59] : memref<1x32xf32, #tpu.memory_space<vmem>>, vector<1x32xf32>
    %c0_60 = arith.constant 0 : index
    %c0_61 = arith.constant 0 : index
    %127 = vector.load %arg15[%c0_60, %c0_61] : memref<1x32xf32, #tpu.memory_space<vmem>>, vector<1x32xf32>
    %c0_62 = arith.constant 0 : index
    %c0_63 = arith.constant 0 : index
    %128 = vector.load %arg16[%c0_62, %c0_63] : memref<1x32xf32, #tpu.memory_space<vmem>>, vector<1x32xf32>
    %129 = vector.extract_strided_slice %123 {offsets = [0, 0], sizes = [32, 32], strides = [1, 1]} : vector<32x96xf32> to vector<32x32xf32>
    %cst_64 = arith.constant dense<0.000000e+00> : vector<8x32xf32>
    %130 = tpu.matmul %122, %129, %cst_64 {dimension_numbers = #tpu.dot_dimension_numbers<[1], [0], [0], [1], [0, 0, 1, 1], [], []>} : vector<8x32xf32>, vector<32x32xf32>, vector<8x32xf32> -> vector<8x32xf32>
    %131 = vector.extract_strided_slice %124 {offsets = [0, 0], sizes = [1, 32], strides = [1, 1]} : vector<1x96xf32> to vector<1x32xf32>
    %132 = vector.broadcast %131 : vector<1x32xf32> to vector<8x32xf32>
    %133 = arith.addf %130, %132 : vector<8x32xf32>
    %134 = vector.extract_strided_slice %123 {offsets = [0, 32], sizes = [32, 64], strides = [1, 1]} : vector<32x96xf32> to vector<32x64xf32>
    %cst_65 = arith.constant dense<0.000000e+00> : vector<8x64xf32>
    %135 = tpu.matmul %1, %134, %cst_65 {dimension_numbers = #tpu.dot_dimension_numbers<[1], [0], [0], [1], [0, 0, 1, 1], [], []>} : vector<8x32xf32>, vector<32x64xf32>, vector<8x64xf32> -> vector<8x64xf32>
    %136 = vector.extract_strided_slice %124 {offsets = [0, 32], sizes = [1, 64], strides = [1, 1]} : vector<1x96xf32> to vector<1x64xf32>
    %137 = vector.broadcast %136 : vector<1x64xf32> to vector<8x64xf32>
    %138 = arith.addf %135, %137 : vector<8x64xf32>
    %139 = vector.extract_strided_slice %138 {offsets = [0, 0], sizes = [8, 32], strides = [1, 1]} : vector<8x64xf32> to vector<8x32xf32>
    %140 = vector.extract_strided_slice %138 {offsets = [0, 32], sizes = [8, 32], strides = [1, 1]} : vector<8x64xf32> to vector<8x32xf32>
    %cst_66 = arith.constant 8.000000e+00 : f32
    %141 = math.sqrt %cst_66 : f32
    %cst_67 = arith.constant 1.000000e+00 : f32
    %142 = arith.divf %cst_67, %141 : f32
    %143 = vector.broadcast %142 : f32 to vector<8x32xf32>
    %144 = arith.mulf %133, %143 : vector<8x32xf32>
    %145 = vector.extract_strided_slice %144 {offsets = [0, 0], sizes = [8, 8], strides = [1, 1]} : vector<8x32xf32> to vector<8x8xf32>
    %146 = vector.extract_strided_slice %139 {offsets = [0, 0], sizes = [8, 8], strides = [1, 1]} : vector<8x32xf32> to vector<8x8xf32>
    %147 = vector.extract_strided_slice %140 {offsets = [0, 0], sizes = [8, 8], strides = [1, 1]} : vector<8x32xf32> to vector<8x8xf32>
    %cst_68 = arith.constant dense<0.000000e+00> : vector<8x8xf32>
    %148 = tpu.matmul %145, %146, %cst_68 {dimension_numbers = #tpu.dot_dimension_numbers<[1], [1], [0], [0], [0, 0, 1, 0], [], []>} : vector<8x8xf32>, vector<8x8xf32>, vector<8x8xf32> -> vector<8x8xf32>
    %cst_69 = arith.constant -1.000000e+09 : f32
    %149 = vector.broadcast %cst_69 : f32 to vector<8x8xf32>
    %150 = arith.select %11, %149, %148 : vector<8x8xi1>, vector<8x8xf32>
    %cst_70 = arith.constant dense<0xFF800000> : vector<8xf32>
    %151 = vector.multi_reduction <maximumf>, %150, %cst_70 [1] : vector<8x8xf32> to vector<8xf32>
    %152 = vector.shape_cast %151 : vector<8xf32> to vector<8x1xf32>
    %153 = vector.broadcast %152 : vector<8x1xf32> to vector<8x8xf32>
    %154 = arith.subf %150, %153 : vector<8x8xf32>
    %155 = math.exp %154 : vector<8x8xf32>
    %cst_71 = arith.constant dense<0.000000e+00> : vector<8xf32>
    %156 = vector.multi_reduction <add>, %155, %cst_71 [1] : vector<8x8xf32> to vector<8xf32>
    %157 = vector.shape_cast %156 : vector<8xf32> to vector<8x1xf32>
    %158 = tpu.reciprocal %157 {approx = true} : vector<8x1xf32> -> vector<8x1xf32>
    %159 = vector.broadcast %158 : vector<8x1xf32> to vector<8x8xf32>
    %160 = arith.mulf %155, %159 : vector<8x8xf32>
    %cst_72 = arith.constant dense<0.000000e+00> : vector<8x8xf32>
    %161 = tpu.matmul %160, %147, %cst_72 {dimension_numbers = #tpu.dot_dimension_numbers<[1], [0], [0], [1], [0, 0, 1, 1], [], []>} : vector<8x8xf32>, vector<8x8xf32>, vector<8x8xf32> -> vector<8x8xf32>
    %162 = vector.extract_strided_slice %144 {offsets = [0, 8], sizes = [8, 8], strides = [1, 1]} : vector<8x32xf32> to vector<8x8xf32>
    %163 = vector.extract_strided_slice %139 {offsets = [0, 8], sizes = [8, 8], strides = [1, 1]} : vector<8x32xf32> to vector<8x8xf32>
    %164 = vector.extract_strided_slice %140 {offsets = [0, 8], sizes = [8, 8], strides = [1, 1]} : vector<8x32xf32> to vector<8x8xf32>
    %cst_73 = arith.constant dense<0.000000e+00> : vector<8x8xf32>
    %165 = tpu.matmul %162, %163, %cst_73 {dimension_numbers = #tpu.dot_dimension_numbers<[1], [1], [0], [0], [0, 0, 1, 0], [], []>} : vector<8x8xf32>, vector<8x8xf32>, vector<8x8xf32> -> vector<8x8xf32>
    %cst_74 = arith.constant -1.000000e+09 : f32
    %166 = vector.broadcast %cst_74 : f32 to vector<8x8xf32>
    %167 = arith.select %11, %166, %165 : vector<8x8xi1>, vector<8x8xf32>
    %cst_75 = arith.constant dense<0xFF800000> : vector<8xf32>
    %168 = vector.multi_reduction <maximumf>, %167, %cst_75 [1] : vector<8x8xf32> to vector<8xf32>
    %169 = vector.shape_cast %168 : vector<8xf32> to vector<8x1xf32>
    %170 = vector.broadcast %169 : vector<8x1xf32> to vector<8x8xf32>
    %171 = arith.subf %167, %170 : vector<8x8xf32>
    %172 = math.exp %171 : vector<8x8xf32>
    %cst_76 = arith.constant dense<0.000000e+00> : vector<8xf32>
    %173 = vector.multi_reduction <add>, %172, %cst_76 [1] : vector<8x8xf32> to vector<8xf32>
    %174 = vector.shape_cast %173 : vector<8xf32> to vector<8x1xf32>
    %175 = tpu.reciprocal %174 {approx = true} : vector<8x1xf32> -> vector<8x1xf32>
    %176 = vector.broadcast %175 : vector<8x1xf32> to vector<8x8xf32>
    %177 = arith.mulf %172, %176 : vector<8x8xf32>
    %cst_77 = arith.constant dense<0.000000e+00> : vector<8x8xf32>
    %178 = tpu.matmul %177, %164, %cst_77 {dimension_numbers = #tpu.dot_dimension_numbers<[1], [0], [0], [1], [0, 0, 1, 1], [], []>} : vector<8x8xf32>, vector<8x8xf32>, vector<8x8xf32> -> vector<8x8xf32>
    %179 = vector.extract_strided_slice %144 {offsets = [0, 16], sizes = [8, 8], strides = [1, 1]} : vector<8x32xf32> to vector<8x8xf32>
    %180 = vector.extract_strided_slice %139 {offsets = [0, 16], sizes = [8, 8], strides = [1, 1]} : vector<8x32xf32> to vector<8x8xf32>
    %181 = vector.extract_strided_slice %140 {offsets = [0, 16], sizes = [8, 8], strides = [1, 1]} : vector<8x32xf32> to vector<8x8xf32>
    %cst_78 = arith.constant dense<0.000000e+00> : vector<8x8xf32>
    %182 = tpu.matmul %179, %180, %cst_78 {dimension_numbers = #tpu.dot_dimension_numbers<[1], [1], [0], [0], [0, 0, 1, 0], [], []>} : vector<8x8xf32>, vector<8x8xf32>, vector<8x8xf32> -> vector<8x8xf32>
    %cst_79 = arith.constant -1.000000e+09 : f32
    %183 = vector.broadcast %cst_79 : f32 to vector<8x8xf32>
    %184 = arith.select %11, %183, %182 : vector<8x8xi1>, vector<8x8xf32>
    %cst_80 = arith.constant dense<0xFF800000> : vector<8xf32>
    %185 = vector.multi_reduction <maximumf>, %184, %cst_80 [1] : vector<8x8xf32> to vector<8xf32>
    %186 = vector.shape_cast %185 : vector<8xf32> to vector<8x1xf32>
    %187 = vector.broadcast %186 : vector<8x1xf32> to vector<8x8xf32>
    %188 = arith.subf %184, %187 : vector<8x8xf32>
    %189 = math.exp %188 : vector<8x8xf32>
    %cst_81 = arith.constant dense<0.000000e+00> : vector<8xf32>
    %190 = vector.multi_reduction <add>, %189, %cst_81 [1] : vector<8x8xf32> to vector<8xf32>
    %191 = vector.shape_cast %190 : vector<8xf32> to vector<8x1xf32>
    %192 = tpu.reciprocal %191 {approx = true} : vector<8x1xf32> -> vector<8x1xf32>
    %193 = vector.broadcast %192 : vector<8x1xf32> to vector<8x8xf32>
    %194 = arith.mulf %189, %193 : vector<8x8xf32>
    %cst_82 = arith.constant dense<0.000000e+00> : vector<8x8xf32>
    %195 = tpu.matmul %194, %181, %cst_82 {dimension_numbers = #tpu.dot_dimension_numbers<[1], [0], [0], [1], [0, 0, 1, 1], [], []>} : vector<8x8xf32>, vector<8x8xf32>, vector<8x8xf32> -> vector<8x8xf32>
    %196 = vector.extract_strided_slice %144 {offsets = [0, 24], sizes = [8, 8], strides = [1, 1]} : vector<8x32xf32> to vector<8x8xf32>
    %197 = vector.extract_strided_slice %139 {offsets = [0, 24], sizes = [8, 8], strides = [1, 1]} : vector<8x32xf32> to vector<8x8xf32>
    %198 = vector.extract_strided_slice %140 {offsets = [0, 24], sizes = [8, 8], strides = [1, 1]} : vector<8x32xf32> to vector<8x8xf32>
    %cst_83 = arith.constant dense<0.000000e+00> : vector<8x8xf32>
    %199 = tpu.matmul %196, %197, %cst_83 {dimension_numbers = #tpu.dot_dimension_numbers<[1], [1], [0], [0], [0, 0, 1, 0], [], []>} : vector<8x8xf32>, vector<8x8xf32>, vector<8x8xf32> -> vector<8x8xf32>
    %cst_84 = arith.constant -1.000000e+09 : f32
    %200 = vector.broadcast %cst_84 : f32 to vector<8x8xf32>
    %201 = arith.select %11, %200, %199 : vector<8x8xi1>, vector<8x8xf32>
    %cst_85 = arith.constant dense<0xFF800000> : vector<8xf32>
    %202 = vector.multi_reduction <maximumf>, %201, %cst_85 [1] : vector<8x8xf32> to vector<8xf32>
    %203 = vector.shape_cast %202 : vector<8xf32> to vector<8x1xf32>
    %204 = vector.broadcast %203 : vector<8x1xf32> to vector<8x8xf32>
    %205 = arith.subf %201, %204 : vector<8x8xf32>
    %206 = math.exp %205 : vector<8x8xf32>
    %cst_86 = arith.constant dense<0.000000e+00> : vector<8xf32>
    %207 = vector.multi_reduction <add>, %206, %cst_86 [1] : vector<8x8xf32> to vector<8xf32>
    %208 = vector.shape_cast %207 : vector<8xf32> to vector<8x1xf32>
    %209 = tpu.reciprocal %208 {approx = true} : vector<8x1xf32> -> vector<8x1xf32>
    %210 = vector.broadcast %209 : vector<8x1xf32> to vector<8x8xf32>
    %211 = arith.mulf %206, %210 : vector<8x8xf32>
    %cst_87 = arith.constant dense<0.000000e+00> : vector<8x8xf32>
    %212 = tpu.matmul %211, %198, %cst_87 {dimension_numbers = #tpu.dot_dimension_numbers<[1], [0], [0], [1], [0, 0, 1, 1], [], []>} : vector<8x8xf32>, vector<8x8xf32>, vector<8x8xf32> -> vector<8x8xf32>
    %213 = tpu.concatenate %161, %178, %195, %212 in 1 : vector<8x8xf32>, vector<8x8xf32>, vector<8x8xf32>, vector<8x8xf32> -> vector<8x32xf32>
    %cst_88 = arith.constant dense<0.000000e+00> : vector<8x32xf32>
    %214 = tpu.matmul %213, %125, %cst_88 {dimension_numbers = #tpu.dot_dimension_numbers<[1], [0], [0], [1], [0, 0, 1, 1], [], []>} : vector<8x32xf32>, vector<32x32xf32>, vector<8x32xf32> -> vector<8x32xf32>
    %215 = vector.broadcast %126 : vector<1x32xf32> to vector<8x32xf32>
    %216 = arith.addf %214, %215 : vector<8x32xf32>
    %217 = arith.addf %216, %122 : vector<8x32xf32>
    %cst_89 = arith.constant dense<0.000000e+00> : vector<8xf32>
    %218 = vector.multi_reduction <add>, %217, %cst_89 [1] : vector<8x32xf32> to vector<8xf32>
    %219 = vector.shape_cast %218 : vector<8xf32> to vector<8x1xf32>
    %cst_90 = arith.constant 3.200000e+01 : f32
    %220 = vector.broadcast %cst_90 : f32 to vector<8x1xf32>
    %221 = arith.divf %219, %220 : vector<8x1xf32>
    %222 = vector.broadcast %221 : vector<8x1xf32> to vector<8x32xf32>
    %223 = arith.subf %217, %222 : vector<8x32xf32>
    %224 = arith.mulf %223, %223 : vector<8x32xf32>
    %cst_91 = arith.constant dense<0.000000e+00> : vector<8xf32>
    %225 = vector.multi_reduction <add>, %224, %cst_91 [1] : vector<8x32xf32> to vector<8xf32>
    %226 = vector.shape_cast %225 : vector<8xf32> to vector<8x1xf32>
    %cst_92 = arith.constant 3.200000e+01 : f32
    %227 = vector.broadcast %cst_92 : f32 to vector<8x1xf32>
    %228 = arith.divf %226, %227 : vector<8x1xf32>
    %229 = vector.broadcast %221 : vector<8x1xf32> to vector<8x32xf32>
    %230 = arith.subf %217, %229 : vector<8x32xf32>
    %cst_93 = arith.constant 9.99999974E-6 : f32
    %231 = vector.broadcast %cst_93 : f32 to vector<8x1xf32>
    %232 = arith.addf %228, %231 : vector<8x1xf32>
    %233 = math.rsqrt %232 : vector<8x1xf32>
    %234 = vector.broadcast %233 : vector<8x1xf32> to vector<8x32xf32>
    %235 = arith.mulf %230, %234 : vector<8x32xf32>
    %236 = vector.broadcast %127 : vector<1x32xf32> to vector<8x32xf32>
    %237 = arith.mulf %235, %236 : vector<8x32xf32>
    %238 = vector.broadcast %128 : vector<1x32xf32> to vector<8x32xf32>
    %239 = arith.addf %237, %238 : vector<8x32xf32>
    %c0_94 = arith.constant 0 : index
    %c0_95 = arith.constant 0 : index
    %240 = vector.load %arg17[%c0_94, %c0_95] : memref<32x32xf32, #tpu.memory_space<vmem>>, vector<32x32xf32>
    %c0_96 = arith.constant 0 : index
    %c0_97 = arith.constant 0 : index
    %241 = vector.load %arg18[%c0_96, %c0_97] : memref<1x32xf32, #tpu.memory_space<vmem>>, vector<1x32xf32>
    %c0_98 = arith.constant 0 : index
    %c0_99 = arith.constant 0 : index
    %242 = vector.load %arg19[%c0_98, %c0_99] : memref<32x32xf32, #tpu.memory_space<vmem>>, vector<32x32xf32>
    %c0_100 = arith.constant 0 : index
    %c0_101 = arith.constant 0 : index
    %243 = vector.load %arg20[%c0_100, %c0_101] : memref<1x32xf32, #tpu.memory_space<vmem>>, vector<1x32xf32>
    %c0_102 = arith.constant 0 : index
    %c0_103 = arith.constant 0 : index
    %244 = vector.load %arg21[%c0_102, %c0_103] : memref<1x32xf32, #tpu.memory_space<vmem>>, vector<1x32xf32>
    %c0_104 = arith.constant 0 : index
    %c0_105 = arith.constant 0 : index
    %245 = vector.load %arg22[%c0_104, %c0_105] : memref<1x32xf32, #tpu.memory_space<vmem>>, vector<1x32xf32>
    %cst_106 = arith.constant dense<0.000000e+00> : vector<8x32xf32>
    %246 = tpu.matmul %239, %240, %cst_106 {dimension_numbers = #tpu.dot_dimension_numbers<[1], [0], [0], [1], [0, 0, 1, 1], [], []>} : vector<8x32xf32>, vector<32x32xf32>, vector<8x32xf32> -> vector<8x32xf32>
    %247 = vector.broadcast %241 : vector<1x32xf32> to vector<8x32xf32>
    %248 = arith.addf %246, %247 : vector<8x32xf32>
    %cst_107 = arith.constant 0.000000e+00 : f32
    %249 = vector.broadcast %cst_107 : f32 to vector<8x32xf32>
    %250 = arith.maximumf %248, %249 : vector<8x32xf32>
    %cst_108 = arith.constant dense<0.000000e+00> : vector<8x32xf32>
    %251 = tpu.matmul %250, %242, %cst_108 {dimension_numbers = #tpu.dot_dimension_numbers<[1], [0], [0], [1], [0, 0, 1, 1], [], []>} : vector<8x32xf32>, vector<32x32xf32>, vector<8x32xf32> -> vector<8x32xf32>
    %252 = vector.broadcast %243 : vector<1x32xf32> to vector<8x32xf32>
    %253 = arith.addf %251, %252 : vector<8x32xf32>
    %254 = arith.addf %253, %239 : vector<8x32xf32>
    %cst_109 = arith.constant dense<0.000000e+00> : vector<8xf32>
    %255 = vector.multi_reduction <add>, %254, %cst_109 [1] : vector<8x32xf32> to vector<8xf32>
    %256 = vector.shape_cast %255 : vector<8xf32> to vector<8x1xf32>
    %cst_110 = arith.constant 3.200000e+01 : f32
    %257 = vector.broadcast %cst_110 : f32 to vector<8x1xf32>
    %258 = arith.divf %256, %257 : vector<8x1xf32>
    %259 = vector.broadcast %258 : vector<8x1xf32> to vector<8x32xf32>
    %260 = arith.subf %254, %259 : vector<8x32xf32>
    %261 = arith.mulf %260, %260 : vector<8x32xf32>
    %cst_111 = arith.constant dense<0.000000e+00> : vector<8xf32>
    %262 = vector.multi_reduction <add>, %261, %cst_111 [1] : vector<8x32xf32> to vector<8xf32>
    %263 = vector.shape_cast %262 : vector<8xf32> to vector<8x1xf32>
    %cst_112 = arith.constant 3.200000e+01 : f32
    %264 = vector.broadcast %cst_112 : f32 to vector<8x1xf32>
    %265 = arith.divf %263, %264 : vector<8x1xf32>
    %266 = vector.broadcast %258 : vector<8x1xf32> to vector<8x32xf32>
    %267 = arith.subf %254, %266 : vector<8x32xf32>
    %cst_113 = arith.constant 9.99999974E-6 : f32
    %268 = vector.broadcast %cst_113 : f32 to vector<8x1xf32>
    %269 = arith.addf %265, %268 : vector<8x1xf32>
    %270 = math.rsqrt %269 : vector<8x1xf32>
    %271 = vector.broadcast %270 : vector<8x1xf32> to vector<8x32xf32>
    %272 = arith.mulf %267, %271 : vector<8x32xf32>
    %273 = vector.broadcast %244 : vector<1x32xf32> to vector<8x32xf32>
    %274 = arith.mulf %272, %273 : vector<8x32xf32>
    %275 = vector.broadcast %245 : vector<1x32xf32> to vector<8x32xf32>
    %276 = arith.addf %274, %275 : vector<8x32xf32>
    %c0_114 = arith.constant 0 : index
    %c0_115 = arith.constant 0 : index
    %c0_116 = arith.constant 0 : index
    %277 = vector.load %arg23[%c0_114, %c0_115, %c0_116] : memref<1x8x32xf32, #tpu.memory_space<vmem>>, vector<1x8x32xf32>
    %278 = vector.shape_cast %277 : vector<1x8x32xf32> to vector<8x32xf32>
    %279 = vector.shape_cast %276 : vector<8x32xf32> to vector<1x8x32xf32>
    tpu.vector_store %arg23[%c0_114, %c0_115, %c0_116], %279 {strides = array<i32>} : memref<1x8x32xf32, #tpu.memory_space<vmem>>, vector<1x8x32xf32>,
    return
  }
  func.func @transform_0(%arg0: i32) -> (i32, i32, i32) {
    %c0_i32 = arith.constant 0 : i32
    %c0_i32_0 = arith.constant 0 : i32
    %c0_i32_1 = arith.constant 0 : i32
    return %arg0, %c0_i32, %c0_i32_0 : i32, i32, i32
  }
  func.func @transform_1(%arg0: i32) -> (i32, i32, i32) {
    %c0_i32 = arith.constant 0 : i32
    %c0_i32_0 = arith.constant 0 : i32
    %c0_i32_1 = arith.constant 0 : i32
    return %arg0, %c0_i32, %c0_i32_0 : i32, i32, i32
  }
  func.func @transform_2(%arg0: i32) -> (i32, i32, i32) {
    %c0_i32 = arith.constant 0 : i32
    %c0_i32_0 = arith.constant 0 : i32
    %c0_i32_1 = arith.constant 0 : i32
    return %arg0, %c0_i32, %c0_i32_0 : i32, i32, i32
  }
  func.func @transform_3(%arg0: i32) -> (i32, i32, i32) {
    %c0_i32 = arith.constant 0 : i32
    %c0_i32_0 = arith.constant 0 : i32
    %c0_i32_1 = arith.constant 0 : i32
    return %arg0, %c0_i32, %c0_i32_0 : i32, i32, i32
  }
  func.func @transform_4(%arg0: i32) -> (i32, i32) {
    %c0_i32 = arith.constant 0 : i32
    %c0_i32_0 = arith.constant 0 : i32
    %c0_i32_1 = arith.constant 0 : i32
    return %c0_i32, %c0_i32_0 : i32, i32
  }
  func.func @transform_5(%arg0: i32) -> (i32, i32) {
    %c0_i32 = arith.constant 0 : i32
    %c0_i32_0 = arith.constant 0 : i32
    %c0_i32_1 = arith.constant 0 : i32
    return %c0_i32, %c0_i32_0 : i32, i32
  }
  func.func @transform_6(%arg0: i32) -> (i32, i32) {
    %c0_i32 = arith.constant 0 : i32
    %c0_i32_0 = arith.constant 0 : i32
    %c0_i32_1 = arith.constant 0 : i32
    return %c0_i32, %c0_i32_0 : i32, i32
  }
  func.func @transform_7(%arg0: i32) -> (i32, i32) {
    %c0_i32 = arith.constant 0 : i32
    %c0_i32_0 = arith.constant 0 : i32
    %c0_i32_1 = arith.constant 0 : i32
    return %c0_i32, %c0_i32_0 : i32, i32
  }
  func.func @transform_8(%arg0: i32) -> (i32, i32) {
    %c0_i32 = arith.constant 0 : i32
    %c0_i32_0 = arith.constant 0 : i32
    %c0_i32_1 = arith.constant 0 : i32
    return %c0_i32, %c0_i32_0 : i32, i32
  }
  func.func @transform_9(%arg0: i32) -> (i32, i32) {
    %c0_i32 = arith.constant 0 : i32
    %c0_i32_0 = arith.constant 0 : i32
    %c0_i32_1 = arith.constant 0 : i32
    return %c0_i32, %c0_i32_0 : i32, i32
  }
  func.func @transform_10(%arg0: i32) -> (i32, i32) {
    %c0_i32 = arith.constant 0 : i32
    %c0_i32_0 = arith.constant 0 : i32
    %c0_i32_1 = arith.constant 0 : i32
    return %c0_i32, %c0_i32_0 : i32, i32
  }
  func.func @transform_11(%arg0: i32) -> (i32, i32) {
    %c0_i32 = arith.constant 0 : i32
    %c0_i32_0 = arith.constant 0 : i32
    %c0_i32_1 = arith.constant 0 : i32
    return %c0_i32, %c0_i32_0 : i32, i32
  }
  func.func @transform_12(%arg0: i32) -> (i32, i32) {
    %c0_i32 = arith.constant 0 : i32
    %c0_i32_0 = arith.constant 0 : i32
    %c0_i32_1 = arith.constant 0 : i32
    return %c0_i32, %c0_i32_0 : i32, i32
  }
  func.func @transform_13(%arg0: i32) -> (i32, i32) {
    %c0_i32 = arith.constant 0 : i32
    %c0_i32_0 = arith.constant 0 : i32
    %c0_i32_1 = arith.constant 0 : i32
    return %c0_i32, %c0_i32_0 : i32, i32
  }
  func.func @transform_14(%arg0: i32) -> (i32, i32) {
    %c0_i32 = arith.constant 0 : i32
    %c0_i32_0 = arith.constant 0 : i32
    %c0_i32_1 = arith.constant 0 : i32
    return %c0_i32, %c0_i32_0 : i32, i32
  }
  func.func @transform_15(%arg0: i32) -> (i32, i32) {
    %c0_i32 = arith.constant 0 : i32
    %c0_i32_0 = arith.constant 0 : i32
    %c0_i32_1 = arith.constant 0 : i32
    return %c0_i32, %c0_i32_0 : i32, i32
  }
  func.func @transform_16(%arg0: i32) -> (i32, i32) {
    %c0_i32 = arith.constant 0 : i32
    %c0_i32_0 = arith.constant 0 : i32
    %c0_i32_1 = arith.constant 0 : i32
    return %c0_i32, %c0_i32_0 : i32, i32
  }
  func.func @transform_17(%arg0: i32) -> (i32, i32) {
    %c0_i32 = arith.constant 0 : i32
    %c0_i32_0 = arith.constant 0 : i32
    %c0_i32_1 = arith.constant 0 : i32
    return %c0_i32, %c0_i32_0 : i32, i32
  }
  func.func @transform_18(%arg0: i32) -> (i32, i32) {
    %c0_i32 = arith.constant 0 : i32
    %c0_i32_0 = arith.constant 0 : i32
    %c0_i32_1 = arith.constant 0 : i32
    return %c0_i32, %c0_i32_0 : i32, i32
  }
  func.func @transform_19(%arg0: i32) -> (i32, i32) {
    %c0_i32 = arith.constant 0 : i32
    %c0_i32_0 = arith.constant 0 : i32
    %c0_i32_1 = arith.constant 0 : i32
    return %c0_i32, %c0_i32_0 : i32, i32
  }
  func.func @transform_20(%arg0: i32) -> (i32, i32) {
    %c0_i32 = arith.constant 0 : i32
    %c0_i32_0 = arith.constant 0 : i32
    %c0_i32_1 = arith.constant 0 : i32
    return %c0_i32, %c0_i32_0 : i32, i32
  }
  func.func @transform_21(%arg0: i32) -> (i32, i32) {
    %c0_i32 = arith.constant 0 : i32
    %c0_i32_0 = arith.constant 0 : i32
    %c0_i32_1 = arith.constant 0 : i32
    return %c0_i32, %c0_i32_0 : i32, i32
  }
  func.func @transform_22(%arg0: i32) -> (i32, i32, i32) {
    %c0_i32 = arith.constant 0 : i32
    %c0_i32_0 = arith.constant 0 : i32
    %c0_i32_1 = arith.constant 0 : i32
    return %arg0, %c0_i32, %c0_i32_0 : i32, i32, i32
  }
}

</mosaic_0001>

<bundles_post_ra>
// kernel: decoder_layer.1
= control target key start
LH: loop header
LB: loop body
LE: loop exit
PB: predicated region body
PF: predicated region fallthrough
CT: control target
= control target key end

     0   :  { %s4749_s0 = inlined_call_operand.hbm [shape: f32[2,8,32], index: 0, kind: input, shape index: {}]   ;;  %s4750_s1 = inlined_call_operand.hbm [shape: f32[2,8,32], index: 1, kind: input, shape index: {}]   ;;  %s4751_s2 = inlined_call_operand.hbm [shape: s32[2,8,8], index: 2, kind: input, shape index: {}]   ;;  %s4752_s3 = inlined_call_operand.hbm [shape: s32[2,8,8], index: 3, kind: input, shape index: {}]   ;;  %s4753_s4 = inlined_call_operand.hbm [shape: f32[32,96], index: 4, kind: input, shape index: {}]   ;;  %s4754_s5 = inlined_call_operand.vmem [shape: f32[1,96], index: 5, kind: input, shape index: {}]   ;;  %s4755_s6 = inlined_call_operand.hbm [shape: f32[32,32], index: 6, kind: input, shape index: {}]   ;;  %s4756_s7 = inlined_call_operand.vmem [shape: f32[1,32], index: 7, kind: input, shape index: {}]   ;;  %s4757_s8 = inlined_call_operand.vmem [shape: f32[1,32], index: 8, kind: input, shape index: {}, may-alias: {8,14,20}]   ;;  %s4758_s9 = inlined_call_operand.vmem [shape: f32[1,32], index: 9, kind: input, shape index: {}, may-alias: {9,15,21}]   ;;  %s4759_s10 = inlined_call_operand.hbm [shape: f32[32,96], index: 10, kind: input, shape index: {}]   ;;  %s4760_s11 = inlined_call_operand.vmem [shape: f32[1,96], index: 11, kind: input, shape index: {}]   ;;  %s4761_s12 = inlined_call_operand.hbm [shape: f32[32,32], index: 12, kind: input, shape index: {}]   ;;  %s4762_s13 = inlined_call_operand.vmem [shape: f32[1,32], index: 13, kind: input, shape index: {}]   ;;  %s4763_s14 = inlined_call_operand.vmem [shape: f32[1,32], index: 14, kind: input, shape index: {}, may-alias: {8,14,20}]   ;;  %s4764_s15 = inlined_call_operand.vmem [shape: f32[1,32], index: 15, kind: input, shape index: {}, may-alias: {9,15,21}]   ;;  %s4765_s16 = inlined_call_operand.hbm [shape: f32[32,32], index: 16, kind: input, shape index: {}]   ;;  %s4766_s17 = inlined_call_operand.vmem [shape: f32[1,32], index: 17, kind: input, shape index: {}]   ;;  %s4767_s18 = inlined_call_operand.hbm [shape: f32[32,32], index: 18, kind: input, shape index: {}]   ;;  %s4768_s19 = inlined_call_operand.vmem [shape: f32[1,32], index: 19, kind: input, shape index: {}]   ;;  %s4769_s20 = inlined_call_operand.vmem [shape: f32[1,32], index: 20, kind: input, shape index: {}, may-alias: {8,14,20}]   ;;  %s4770_s21 = inlined_call_operand.vmem [shape: f32[1,32], index: 21, kind: input, shape index: {}, may-alias: {9,15,21}]   ;;  %s4771_s22 = inlined_call_operand.hbm [shape: f32[2,8,32], index: 22, kind: output, shape index: {}]  }
   0x1   :  { %4799 = sst [smem:[#allocation33_spill]] %s4749_s0 }
   0x2   :  { %4800 = sst [smem:[#allocation34_spill]] %s4750_s1 }
   0x3   :  { %4801 = sst [smem:[#allocation35_spill]] %s4751_s2 }
   0x4   :  { %4802 = sst [smem:[#allocation36_spill]] %s4752_s3 }
   0x5   :  { %4803 = sst [smem:[#allocation37_spill]] %s4753_s4 }
   0x6   :  { %4804 = sst [smem:[#allocation38_spill]] %s4754_s5 }
   0x7   :  { %4805 = sst [smem:[#allocation39_spill]] %s4755_s6 }
   0x8   :  { %4806 = sst [smem:[#allocation40_spill]] %s4757_s8 }
   0x9   :  { %4807 = sst [smem:[#allocation41_spill]] %s4758_s9 }
   0xa   :  { %4808 = sst [smem:[#allocation42_spill]] %s4759_s10 }
   0xb   :  { %4809 = sst [smem:[#allocation43_spill]] %s4761_s12 }
   0xc   :  { %4810 = sst [smem:[#allocation44_spill]] %s4762_s13 }
   0xd   :  { %4811 = sst [smem:[#allocation45_spill]] %s4763_s14 }
   0xe   :  { %4812 = sst [smem:[#allocation46_spill]] %s4764_s15 }
   0xf   :  { %4813 = sst [smem:[#allocation47_spill]] %s4765_s16 }
  0x10   :  { %4814 = sst [smem:[#allocation48_spill]] %s4766_s17 }
  0x11   :  { %4815 = sst [smem:[#allocation49_spill]] %s4768_s19 }
  0x12   :  { %4816 = sst [smem:[#allocation50_spill]] %s4769_s20 }
  0x13   :  { %4817 = sst [smem:[#allocation51_spill]] %s4770_s21 }
  0x14   :  { %4818 = sst [smem:[#allocation52_spill]] %s4771_s22 }
  0x15   :  { %27 = vsyncpa [#allocation3], 0 }
  0x16   :  { %29 = vsyncpa [#allocation3 + $0x1], 0 }
  0x17   :  { %30 = vsyncpa [#allocation6], 0 }
  0x18   :  { %32 = vsyncpa [#allocation6 + $0x1], 0 }
  0x19   :  { %33 = vsyncpa [#allocation9], 0 }
  0x1a   :  { %35 = vsyncpa [#allocation9 + $0x1], 0 }
  0x1b   :  { %36 = vsyncpa [#allocation12], 0 }
  0x1c   :  { %37 = vsyncpa [#allocation15], 0 }
  0x1d   :  { %38 = vsyncpa [#allocation18], 0 }
  0x1e   :  { %39 = vsyncpa [#allocation4], 0 }
  0x1f   :  { %41 = vsyncpa [#allocation4 + $0x1], 0  ;;  %s4138_s3 = smov 0   ;;  %s4140_s28 = smov 0  }
  0x20   :  { %s4142_s29 = smov 0   ;;  %s4144_s30 = smov 0  }
  0x21 LB: > { %4819 = sst [smem:[#allocation28_spill]] %s3980_s3  ;;  %s3994_s4 = smov [#allocation10]   ;;  %s3992_s30 = sphi %s4144_s30, %s4874_s30   ;;  %s3988_s29 = sphi %s4142_s29, %s4878_s29   ;;  %s3984_s28 = sphi %s4140_s28, %s4877_s28   ;;  %s3980_s3 = sphi %s4138_s3, %s4876_s3  }
  0x22   : > { %s572_s0 = sshll.u32 %s3994_s4, 4  ;;  %s4159_s23 = sadd.s32 4294967295, %s3992_s30   ;;  %s573_s0 = int_to_ptr.vmem [resolvable:$true] %s572_s0 }
  0x23   : > { %p3159_p0 = scmp.ge.s32.totalorder %s3992_s30, 1  ;;  %p4789_p1 = scmp.eq.s32.totalorder %s4159_s23, 0 }
  0x24   : > { %p560_p2 = scmp.lt.s32.totalorder %s3992_s30, 3  ;;  %s3995_s5 = smov [#allocation11]  }
  0x25   : > { %s588_s24 = sshll.u32 %s3995_s5, 4  ;;  %s3996_s25 = smov [#allocation14]   ;;  %s4177_s24 = int_to_ptr.vmem [resolvable:$true] %s588_s24 }
  0x26   : > { %p4164_p3 = pnand %p3159_p0, %p560_p2  ;;  %s626_s26 = sshll.u32 %s3996_s25, 4  ;;  %s4179_s26 = int_to_ptr.vmem [resolvable:$true] %s626_s26 }
  0x27   : > { %s3647_s27 = scalar_lea.vmem %s573_s0, 512  ;;  %p3655_p11 = scmp.lt.s32.totalorder %s573_s0, %s573_s0 }
  0x28   : > { %s4820_s1 = scalar_select %p4164_p3, 1, 0 }
  0x29   : > { %p3492_p5 = pneg %p4164_p3  ;;  %p3648_p8 = scmp.ne.s32.totalorder %s573_s0, %s3647_s27 }
  0x2a   : > { %p3656_p12 = scmp.lt.s32.totalorder %s3647_s27, %s3647_s27 }
  0x2b   : > { %p4173_p6 = pnand %p3492_p5, %p4789_p1 }
  0x2c   : > { %p3657_p13 = por %p3656_p12, %p3655_p11 }
  0x2d   : > { %s4821_s6 = scalar_select %p4173_p6, 1, 0 }
  0x2e   : > { %p4183_p7 = pneg %p4173_p6 }
  0x30   : > { %s4822_s2 = scalar_select %p4183_p7, 1, 0 }
  0x31   : > { %p3650_p9 = pnand %p3648_p8, %p4183_p7 }
  0x33   : > { %p3651_p10 = pneg %p3650_p9 }
  0x35   : > { %p3658_p0 = pnand %p3657_p13, %p3651_p10 }
  0x37   : > { %3661 = shalt.err (!%p3658_p0)
}
  0x38   : > { %s4778_s4 = smov 128   ;;  %s4780_s5 = smov 8  }
  0x39   : > { %s4823_s21 = sld [smem:[#allocation37_spill]]  ;;  %s3673_s20 = scalar_lea.vmem %s4177_s24, 512 }
  0x3a   : > { %p3674_p2 = scmp.ne.s32.totalorder %s4177_s24, %s3673_s20  ;;  %p3681_p9 = scmp.lt.s32.totalorder %s4177_s24, %s4177_s24 }
  0x3b   : > { %p3682_p10 = scmp.lt.s32.totalorder %s3673_s20, %s3673_s20 }
  0x3c   : > { %p3676_p5 = pnand %p3674_p2, %p4183_p7 }
  0x3d   : > { %p3683_p11 = por %p3682_p10, %p3681_p9 }
  0x3e   : > { %p3677_p8 = pneg %p3676_p5 }
  0x3f   : > { %3495 = dma.hbm_to_vmem [thread:$0]  (!%p4173_p6), %s4823_s21, 512, %s573_s0, [#allocation9], %s4778_s4, %s4778_s4, %s4780_s5  }
  0x40   : > { %p3684_p12 = pnand %p3683_p11, %p3677_p8 }
  0x42   : > { %3687 = shalt.err (!%p3684_p12)
}
  0x43   : > { %s4824_s21 = sld [smem:[#allocation39_spill]]  ;;  %s3699_s0 = scalar_lea.vmem %s4179_s26, 512 }
  0x44   : > { %p3700_p13 = scmp.ne.s32.totalorder %s4179_s26, %s3699_s0  ;;  %p3707_p5 = scmp.lt.s32.totalorder %s4179_s26, %s4179_s26 }
  0x45   : > { %p3708_p8 = scmp.lt.s32.totalorder %s3699_s0, %s3699_s0 }
  0x46   : > { %p3702_p0 = pnand %p3700_p13, %p4183_p7 }
  0x47   : > { %p3709_p9 = por %p3708_p8, %p3707_p5 }
  0x48   : > { %p3703_p2 = pneg %p3702_p0 }
  0x49   : > { %3498 = dma.hbm_to_vmem [thread:$0]  (!%p4173_p6), %s4824_s21, 512, %s4177_s24, [#allocation12], %s4778_s4, %s4778_s4, %s4780_s5  }
  0x4a   : > { %p3710_p10 = pnand %p3709_p9, %p3703_p2 }
  0x4c   : > { %3713 = shalt.err (!%p3710_p10)
}
  0x4d   : > { %s4825_s12 = sld [smem:[#allocation43_spill]]  ;;  %s3158_s24 = sadd.s32 4294967294, %s3992_s30  }
  0x4e   : > { %s4229_s27 = sadd.s32 1, %s3992_s30   ;;  %s54_s22 = sadd.s32 1, %s3988_s29 }
  0x4f   : > { %4826 = sst [smem:[#allocation29_spill]] %s4229_s27  ;;  %s51_s21 = ssub.s32 %s3992_s30, %s4229_s27 }
  0x50   : > { %p61_p11 = scmp.ne.s32.totalorder %s3988_s29, %s3984_s28  ;;  %p52_p12 = scmp.eq.s32.totalorder %s51_s21, 0 }
  0x51   : > { %p62_p13 = scmp.eq.s32.totalorder %s3992_s30, 0  ;;  %p67_p0 = scmp.ne.s32.totalorder %s3984_s28, %s3980_s3 }
  0x52   : > { %p547_p2 = scmp.eq.s32.totalorder %s4159_s23, 1  ;;  %p553_p10 = scmp.eq.s32.totalorder %s3158_s24, 1 }
  0x53   : > { %3504 = dma.hbm_to_vmem [thread:$0]  (!%p4173_p6), %s4825_s12, 512, %s4179_s26, [#allocation15], %s4778_s4, %s4778_s4, %s4780_s5  }
  0x54   : > { %s4241_s0 = scalar_select %p52_p12, %s3988_s29, %s54_s22  }
  0x55   : > { %p63_p5 = por %p62_p13, %p61_p11  ;;  %p4245_p8 = por %p4789_p1, %p67_p0 }
  0x56   : > { %4827 = sst [smem:[#allocation30_spill]] %s4241_s0  ;;  %p4249_p9 = por %p547_p2, %p61_p11 }
  0x57   : > { %s4828_s26 = scalar_select %p4245_p8, 1, 0 }
  0x58   : > { %s4829_s20 = scalar_select %p4249_p9, 1, 0 }
  0x59   : > { %p3534_p4 = scmp.lt.s32.totalorder %s3992_s30, 2  ;;  %s4785_s25 = sand.u32 1, %s3988_s29  }
  0x5a   : > { %4830 = sst [smem:[#allocation31_spill]] %s4829_s20  ;;  %p4255_p3 = por %p553_p10, %p67_p0 }
  0x5b   : > { %s4261_s22 = sshll.u32 %s4785_s25, 3  ;;  %s4264_s4 = sshll.u32 %s3992_s30, 7 }
  0x5c   : > { %s4831_s21 = scalar_select %p4255_p3, 1, 0 }
  0x5d   : > { %p4266_p12 = pnand %p3534_p4, %p63_p5  ;;  %s4790_s12 = sand.u32 1, %s3992_s30  }
  0x5e   : > { %4832 = sst [smem:[#allocation32_spill]] %s4831_s21  ;;  %s709_s25 = scalar_lea.vmem [#allocation5], %s4261_s22 }
  0x5f   : > { %s4834_s27 = sld [smem:[#allocation34_spill]]  ;;  %s716_s21 = sshll.u32 %s709_s25, 4  ;;  %s717_s21 = int_to_ptr.vmem [resolvable:$true] %s716_s21 }
  0x60   : > { %s4280_s20 = scalar_lea.sflag [#allocation6], %s4790_s12  ;;  %p4286_p11 = pneg %p4266_p12 }
  0x65   : > { %s4275_s3 = scalar_lea.hbm %s4834_s27, %s4264_s4  ;;  %s3719_s15 = scalar_lea.hbm %s4834_s27, 256 }
  0x66   : > { %s3714_s19 = scalar_lea.hbm %s4275_s3, 128  ;;  %p3720_p2 = scmp.lt.s32.totalorder %s4275_s3, %s4834_s27 }
  0x67   : > { %p3715_p4 = scmp.ne.s32.totalorder %s4275_s3, %s3714_s19  ;;  %p3721_p5 = scmp.lt.s32.totalorder %s3719_s15, %s3714_s19 }
  0x69   : > { %p3717_p13 = pnand %p4286_p11, %p3715_p4  ;;  %p3722_p10 = por %p3721_p5, %p3720_p2 }
  0x6b   : > { %p3718_p0 = pneg %p3717_p13 }
  0x6d   : > { %p3723_p1 = pnand %p3722_p10, %p3718_p0 }
  0x6f   : > { %3726 = shalt.err (!%p3723_p1)
}
  0x70   : > { %s3727_s12 = scalar_lea.vmem %s717_s21, 128  ;;  %s3999_s13 = smov [#allocation5]  }
  0x71   : > { %p3728_p3 = scmp.ne.s32.totalorder %s717_s21, %s3727_s12  ;;  %s3732_s9 = sshll.u32 %s3999_s13, 4  ;;  %s3733_s9 = int_to_ptr.vmem [resolvable:$false] %s3732_s9 }
  0x72   : > { %s3734_s8 = scalar_lea.vmem %s3733_s9, 256  ;;  %p3735_p4 = scmp.lt.s32.totalorder %s717_s21, %s3733_s9 }
  0x73   : > { %p3730_p9 = pnand %p3728_p3, %p4286_p11  ;;  %p3736_p13 = scmp.lt.s32.totalorder %s3734_s8, %s3727_s12 }
  0x75   : > { %p3731_p8 = pneg %p3730_p9  ;;  %p3737_p6 = por %p3736_p13, %p3735_p4 }
  0x77   : > { %p3738_p7 = pnand %p3737_p6, %p3731_p8 }
  0x79   : > { %3741 = shalt.err (!%p3738_p7)
}
  0x7a   : > { %3517 = dma.hbm_to_vmem [thread:$0]  (!%p4266_p12), %s4275_s3, 128, %s717_s21, %s4280_s20  }
  0x7b   : > { %s4000_s14 = smov [#allocation13]   ;;  %s4001_s19 = smov [#allocation16]  }
  0x7c   : > { %s610_s15 = sshll.u32 %s4000_s14, 4  ;;  %s648_s0 = sshll.u32 %s4001_s19, 4  ;;  %s611_s15 = int_to_ptr.vmem [resolvable:$true] %s610_s15  ;;  %s649_s0 = int_to_ptr.vmem [resolvable:$true] %s648_s0 }
  0x7d   : > { %s3753_s13 = scalar_lea.vmem %s611_s15, 512  ;;  %p4836_p3 = scmp.ne.s32.totalorder %s4822_s2, 0 }
  0x7e   : > { %p3754_p1 = scmp.ne.s32.totalorder %s611_s15, %s3753_s13  ;;  %p3761_p2 = scmp.lt.s32.totalorder %s611_s15, %s611_s15 }
  0x7f   : > { %p3762_p6 = scmp.lt.s32.totalorder %s3753_s13, %s3753_s13 }
  0x80   : > { %p3756_p9 = pnand %p3754_p1, %p4836_p3 }
  0x81   : > { %p3763_p7 = por %p3762_p6, %p3761_p2 }
  0x82   : > { %p3757_p0 = pneg %p3756_p9 }
  0x84   : > { %p3764_p8 = pnand %p3763_p7, %p3757_p0 }
  0x86   : > { %3767 = shalt.err (!%p3764_p8)
}
  0x87   : > { %p4837_p5 = scmp.ne.s32.totalorder %s4821_s6, 0  ;;  %s4838_s8 = smov 8  }
  0x88   : > { %s4839_s9 = smov 128   ;;  %s4840_s10 = sld [smem:[#allocation42_spill]] }
  0x89   : > { %s3779_s21 = scalar_lea.vmem %s649_s0, 512  ;;  %p3787_p1 = scmp.lt.s32.totalorder %s649_s0, %s649_s0 }
  0x8a   : > { %p3780_p10 = scmp.ne.s32.totalorder %s649_s0, %s3779_s21  ;;  %p3788_p9 = scmp.lt.s32.totalorder %s3779_s21, %s3779_s21 }
  0x8c   : > { %p3782_p4 = pnand %p3780_p10, %p4836_p3  ;;  %p3789_p2 = por %p3788_p9, %p3787_p1 }
  0x8e   : > { %3501 = dma.hbm_to_vmem [thread:$0]  (!%p4837_p5), %s4840_s10, 512, %s611_s15, [#allocation12], %s4839_s9, %s4839_s9, %s4838_s8  }
  0x8f   : > { %p3783_p13 = pneg %p3782_p4 }
  0x91   : > { %p3790_p0 = pnand %p3789_p2, %p3783_p13 }
  0x93   : > { %3793 = shalt.err (!%p3790_p0)
}
  0x94   : > { %s4841_s16 = sld [smem:[#allocation47_spill]]  ;;  %s4002_s14 = smov [#allocation17]  }
  0x95   : > { %s664_s15 = sshll.u32 %s4002_s14, 4  ;;  %s4842_s12 = sld [smem:[#allocation33_spill]]  ;;  %s665_s15 = int_to_ptr.vmem [resolvable:$true] %s664_s15 }
  0x96   : > { %s3805_s21 = scalar_lea.vmem %s665_s15, 512  ;;  %p3813_p10 = scmp.lt.s32.totalorder %s665_s15, %s665_s15 }
  0x97   : > { %p3806_p6 = scmp.ne.s32.totalorder %s665_s15, %s3805_s21  ;;  %p3814_p4 = scmp.lt.s32.totalorder %s3805_s21, %s3805_s21 }
  0x99   : > { %p3808_p7 = pnand %p3806_p6, %p4836_p3  ;;  %p3815_p13 = por %p3814_p4, %p3813_p10 }
  0x9a   : > { %3507 = dma.hbm_to_vmem [thread:$0]  (!%p4837_p5), %s4841_s16, 512, %s649_s0, [#allocation15], %s4839_s9, %s4839_s9, %s4838_s8  }
  0x9b   : > { %s4329_s3 = scalar_lea.hbm %s4842_s12, %s4264_s4  ;;  %p3809_p8 = pneg %p3808_p7 }
  0x9d   : > { %p3816_p1 = pnand %p3815_p13, %p3809_p8 }
  0x9f   : > { %3819 = shalt.err (!%p3816_p1)
}
  0xa0   : > { %3510 = dma.hbm_to_vmem [thread:$0]  (!%p4837_p5), %s4767_s18, 512, %s665_s15, [#allocation18], %s4839_s9, %s4839_s9, %s4838_s8  }
  0xa1   : > { %s691_s2 = scalar_lea.vmem [#allocation2], %s4261_s22  ;;  %s4843_s6 = sld [smem:[#allocation35_spill]] }
  0xa2   : > { %s698_s25 = sshll.u32 %s691_s2, 4  ;;  %s4844_s21 = sand.u32 1, %s3988_s29   ;;  %s699_s25 = int_to_ptr.vmem [resolvable:$true] %s698_s25 }
  0xa3   : > { %s688_s10 = scalar_lea.sflag [#allocation3], %s4844_s21  ;;  %s3820_s16 = scalar_lea.hbm %s4329_s3, 128 }
  0xa4   : > { %p3821_p3 = scmp.ne.s32.totalorder %s4329_s3, %s3820_s16  ;;  %s3825_s27 = scalar_lea.hbm %s4842_s12, 256 }
  0xa5   : > { %p3826_p5 = scmp.lt.s32.totalorder %s4329_s3, %s4842_s12  ;;  %p3827_p0 = scmp.lt.s32.totalorder %s3825_s27, %s3820_s16 }
  0xa6   : > { %p3823_p9 = pnand %p3821_p3, %p4286_p11 }
  0xa7   : > { %s4346_s13 = scalar_lea.hbm %s4843_s6, %s4264_s4  ;;  %p3828_p6 = por %p3827_p0, %p3826_p5 }
  0xa8   : > { %p3824_p2 = pneg %p3823_p9 }
  0xaa   : > { %p3829_p7 = pnand %p3828_p6, %p3824_p2 }
  0xac   : > { %3832 = shalt.err (!%p3829_p7)
}
  0xad   : > { %s3833_s15 = scalar_lea.vmem %s699_s25, 128  ;;  %s4003_s2 = smov [#allocation2]  }
  0xae   : > { %p3834_p8 = scmp.ne.s32.totalorder %s699_s25, %s3833_s15  ;;  %s3838_s14 = sshll.u32 %s4003_s2, 4  ;;  %s3839_s14 = int_to_ptr.vmem [resolvable:$false] %s3838_s14 }
  0xaf   : > { %s3840_s19 = scalar_lea.vmem %s3839_s14, 256  ;;  %p3841_p13 = scmp.lt.s32.totalorder %s699_s25, %s3839_s14 }
  0xb0   : > { %p3836_p10 = pnand %p3834_p8, %p4286_p11  ;;  %p3842_p1 = scmp.lt.s32.totalorder %s3840_s19, %s3833_s15 }
  0xb2   : > { %p3837_p4 = pneg %p3836_p10  ;;  %p3843_p3 = por %p3842_p1, %p3841_p13 }
  0xb4   : > { %p3844_p9 = pnand %p3843_p3, %p3837_p4 }
  0xb6   : > { %3847 = shalt.err (!%p3844_p9)
}
  0xb7   : > { %3514 = dma.hbm_to_vmem [thread:$0]  (!%p4266_p12), %s4329_s3, 128, %s699_s25, %s688_s10  }
  0xb8   : > { %s727_s16 = scalar_lea.vmem [#allocation7], %s4261_s22  ;;  %s4845_s24 = sld [smem:[#allocation36_spill]] }
  0xb9   : > { %s734_s27 = sshll.u32 %s727_s16, 4  ;;  %s3848_s9 = scalar_lea.hbm %s4346_s13, 128  ;;  %s735_s27 = int_to_ptr.vmem [resolvable:$true] %s734_s27 }
  0xba   : > { %p3849_p2 = scmp.ne.s32.totalorder %s4346_s13, %s3848_s9  ;;  %s3853_s14 = scalar_lea.hbm %s4843_s6, 256 }
  0xbb   : > { %p3854_p6 = scmp.lt.s32.totalorder %s4346_s13, %s4843_s6  ;;  %p3855_p7 = scmp.lt.s32.totalorder %s3853_s14, %s3848_s9 }
  0xbc   : > { %p3851_p5 = pnand %p3849_p2, %p4286_p11 }
  0xbd   : > { %p3856_p8 = por %p3855_p7, %p3854_p6 }
  0xbe   : > { %s4371_s8 = scalar_lea.hbm %s4845_s24, %s4264_s4  ;;  %p3852_p0 = pneg %p3851_p5 }
  0xc0   : > { %p3857_p10 = pnand %p3856_p8, %p3852_p0 }
  0xc2   : > { %3860 = shalt.err (!%p3857_p10)
}
  0xc3   : > { %s3861_s10 = scalar_lea.vmem %s735_s27, 128  ;;  %s4004_s4 = smov [#allocation7]  }
  0xc4   : > { %p3862_p4 = scmp.ne.s32.totalorder %s735_s27, %s3861_s10  ;;  %s3866_s3 = sshll.u32 %s4004_s4, 4  ;;  %s3867_s3 = int_to_ptr.vmem [resolvable:$false] %s3866_s3 }
  0xc5   : > { %s3868_s25 = scalar_lea.vmem %s3867_s3, 256  ;;  %p3869_p3 = scmp.lt.s32.totalorder %s735_s27, %s3867_s3 }
  0xc6   : > { %p3864_p13 = pnand %p3862_p4, %p4286_p11  ;;  %p3870_p9 = scmp.lt.s32.totalorder %s3868_s25, %s3861_s10 }
  0xc8   : > { %p3865_p1 = pneg %p3864_p13  ;;  %p3871_p2 = por %p3870_p9, %p3869_p3 }
  0xca   : > { %p3872_p5 = pnand %p3871_p2, %p3865_p1 }
  0xcc   : > { %3875 = shalt.err (!%p3872_p5)
}
  0xcd   : > { %3520 = dma.hbm_to_vmem [thread:$0]  (!%p4266_p12), %s4346_s13, 128, %s735_s27, %s4280_s20  }
  0xce   : > { %s745_s12 = scalar_lea.vmem [#allocation8], %s4261_s22  ;;  %s4846_s21 = sand.u32 1, %s3992_s30  }
  0xcf   : > { %s752_s16 = sshll.u32 %s745_s12, 4  ;;  %s742_s0 = scalar_lea.sflag [#allocation9], %s4846_s21  ;;  %s753_s16 = int_to_ptr.vmem [resolvable:$true] %s752_s16 }
  0xd0   : > { %s3876_s9 = scalar_lea.hbm %s4371_s8, 128  ;;  %s3881_s14 = scalar_lea.hbm %s4845_s24, 256 }
  0xd1   : > { %p3877_p0 = scmp.ne.s32.totalorder %s4371_s8, %s3876_s9  ;;  %p3882_p8 = scmp.lt.s32.totalorder %s4371_s8, %s4845_s24 }
  0xd2   : > { %p3883_p10 = scmp.lt.s32.totalorder %s3881_s14, %s3876_s9 }
  0xd3   : > { %p3879_p6 = pnand %p3877_p0, %p4286_p11 }
  0xd4   : > { %p3884_p4 = por %p3883_p10, %p3882_p8 }
  0xd5   : > { %p3880_p7 = pneg %p3879_p6 }
  0xd7   : > { %p3885_p13 = pnand %p3884_p4, %p3880_p7 }
  0xd9   : > { %3888 = shalt.err (!%p3885_p13)
}
  0xda   : > { %s3889_s20 = scalar_lea.vmem %s753_s16, 128  ;;  %s4005_s22 = smov [#allocation8]  }
  0xdb   : > { %p3890_p1 = scmp.ne.s32.totalorder %s753_s16, %s3889_s20  ;;  %s3894_s13 = sshll.u32 %s4005_s22, 4  ;;  %s3895_s13 = int_to_ptr.vmem [resolvable:$false] %s3894_s13 }
  0xdc   : > { %s3896_s27 = scalar_lea.vmem %s3895_s13, 256  ;;  %p3897_p2 = scmp.lt.s32.totalorder %s753_s16, %s3895_s13 }
  0xdd   : > { %p3892_p3 = pnand %p3890_p1, %p4286_p11  ;;  %p3898_p5 = scmp.lt.s32.totalorder %s3896_s27, %s3889_s20 }
  0xdf   : > { %p3893_p9 = pneg %p3892_p3  ;;  %p3899_p0 = por %p3898_p5, %p3897_p2 }
  0xe1   : > { %p3900_p6 = pnand %p3899_p0, %p3893_p9 }
  0xe3   : > { %3903 = shalt.err (!%p3900_p6)
}
  0xe4   : > { %3523 = dma.hbm_to_vmem [thread:$0]  (!%p4266_p12), %s4371_s8, 128, %s753_s16, %s742_s0  }
  0xe5   : > { %p4847_p7 = scmp.ne.s32.totalorder %s4820_s1, 0 }
  0xe6   : > { %s4412_s17 = sand.u32 (!%p4847_p7), 1, %s3984_s28   ;;  %p4848_p11 = scmp.ne.s32.totalorder (!%p4847_p7), %s4828_s26, 0 }
  0xe7   : > { %761 = sbr.rel (%p4847_p7) target bundleno = 4809 (0x12c9), region = 108  ;;  %s4415_s4 = sshll.u32 (!%p4847_p7), %s4412_s17, 3 }
  0xe8   : > { %s764_s3 = scalar_lea.sflag (!%p4847_p7), [#allocation3], %s4412_s17  ;;  %s767_s25 = scalar_lea.vmem (!%p4847_p7), [#allocation2], %s4415_s4 }
  0xec   : > { %3947 = dma.done.wait (%p4848_p11), %s764_s3, 128  }
  0xed   : > { %3949 = vsyncadd (%p4848_p11), %s764_s3, 4294967168  ;;  %s772_s1 = sand.u32 1, %s4159_s23   ;;  %s776_s8 = scalar_lea.vmem [#allocation5], %s4415_s4 }
  0xee   : > { %s773_s5 = scalar_lea.sflag [#allocation6], %s772_s1 }
  0xef   : > { %3951 = dma.done.wait (%p4848_p11), %s773_s5, 256  }
  0xf0   : > { %3953 = vsyncadd (%p4848_p11), %s773_s5, 4294967040  ;;  %s785_s12 = scalar_lea.vmem [#allocation7], %s4415_s4  ;;  %s791_s16 = scalar_lea.sflag [#allocation9], %s772_s1 }
  0xf1   : > { %s794_s21 = scalar_lea.vmem [#allocation8], %s4415_s4 }
  0xf2   : > { %3955 = dma.done.wait (%p4848_p11), %s791_s16, 128  }
  0xf3   : > { %3957 = vsyncadd (%p4848_p11), %s791_s16, 4294967168  ;;  %p4849_p12 = scmp.eq.s32.totalorder %s4159_s23, 0 }
  0xf5   : > { %3959 = dma.done.wait (%p4849_p12), [#allocation9], 512   ;;  %p4850_p8 = pmov %p4849_p12 }
  0xf7   : > { %3961 = vsyncadd (%p4850_p8), [#allocation9], 4294966784  ;;  %p4851_p10 = pmov %p4850_p8 }
  0xf8   : > { %p4852_p4 = pmov %p4850_p8 }
  0xf9   : > { %3963 = dma.done.wait (%p4851_p10), [#allocation12], 1024  }
  0xfa   : > { %3965 = vsyncadd (%p4852_p4), [#allocation12], 4294966272  ;;  %p4853_p13 = pmov %p4852_p4 }
  0xfb   : > { %p4854_p1 = pmov %p4852_p4 }
  0xfc   : > { %3967 = dma.done.wait (%p4853_p13), [#allocation15], 1024  }
  0xfd   : > { %3969 = vsyncadd (%p4854_p1), [#allocation15], 4294966272  ;;  %p4855_p3 = pmov %p4854_p1 }
  0xfe   : > { %p4856_p9 = pmov %p4854_p1 }
  0xff   : > { %3971 = dma.done.wait (%p4855_p3), [#allocation18], 512  }
 0x100   : > { %3973 = vsyncadd (%p4856_p9), [#allocation18], 4294966784  ;;  %v4006_v0 = vmov 0.0   ;;  %vm4007_vm0 = vmmov 0   ;;  %v903_v1 = vld [vmem:[#allocation10 + $0x18] sm:$0xff]  ;;  %v902_v2 = vld [vmem:[#allocation10 + $0x10] sm:$0xff] }
 0x101   : > { %3301 = vmatprep.subr.mxu0 %v4006_v0  ;;  %3309 = vmatprep.mubr.msk.f32.mxu0 %vm4007_vm0, %v4006_v0  ;;  %v901_v3 = vld [vmem:[#allocation10 + $0x8] sm:$0xff]  ;;  %v900_v4 = vld [vmem:[#allocation10] sm:$0xff]  ;;  %v4461_v5 = vld [vmem:[%s776_s8] sm:$0xff]  ;;  %vm918_vm1 = vcmask 261120   ;;  %s4857_s9 = sld [smem:[#allocation38_spill]]  ;;  %s4008_s15 = smov 64  }
 0x102   : > { %3312 = vmatprep.subr.mxu1 %v4006_v0  ;;  %3314 = vmatprep.mubr.msk.f32.mxu1 %vm4007_vm0, %v4006_v0  ;;  %s4009_s2 = smov 96   ;;  %s4010_s14 = smov 88   ;;  %vm996_vm2 = vcmask 64512   ;;  %v896_v16 = vld [vmem:[%s794_s21] sm:$0xff]  ;;  %vm1671_vm4 = vcmask 130048   ;;  %vm1673_vm5 = vcmask 195584  }
 0x103   : > { %3302 = vmatpush3.msra.mxu0 %v903_v1  ;;  %s4011_s19 = smov 120   ;;  %s4012_s10 = smov 80   ;;  %vm897_vm3 = vcmp.ne.s32.totalorder %v896_v16, 0 }
 0x104   : > { %3303 = vmatprep.subr.mxu0 %v4006_v0  ;;  %s4013_s20 = smov 72   ;;  %s4014_s22 = smov 112  }
 0x105   : > { %3304 = vmatpush3.msra.mxu0 %v902_v2  ;;  %s4015_s13 = smov 104   ;;  %s4016_s27 = smov 56  }
 0x106   : > { %3305 = vmatprep.subr.mxu0 %v4006_v0  ;;  %s4017_s3 = smov 48   ;;  %s4018_s1 = smov 40  }
 0x107   : > { %3306 = vmatpush3.msra.mxu0 %v901_v3  ;;  %v3187_v6 = vld [vmem:[%s4857_s9] ss:$0 sm:$0xff]  ;;  %s4019_s5 = smov 8   ;;  %s4020_s8 = smov 16  }
 0x108   : > { %3307 = vmatprep.subr.mxu0 %v4006_v0  ;;  %s4021_s16 = smov 24   ;;  %s4859_s26 = sld [smem:[#allocation41_spill]] }
 0x109   : > { %3308 = vmatpush3.msra.mxu0 %v900_v4  ;;  %s4866_s21 = sld [smem:[#allocation50_spill]] }
 0x10a   : > { %3310 = vmatmul.mubr.msk.f32.vlgmr.msra.gmra.mxu0 %vm918_vm1, %v4461_v5  ;;  %3332 = vmatprep.subr.mxu0 %v4006_v0 }
 0x10b   : > { %3334 = vmatprep.mubr.msk.f32.mxu0 %vm4007_vm0, %v4006_v0 }
 0x1ca   : > { %v988_v7 = vpop.f32.mrf.mxu0 }
 0x1cb   : > { %v4472_v8 = vadd.f32 %v3187_v6, %v988_v7 }
 0x1cc   : > { %v3311_v9 = vpop.f32.mrf.mxu0 }
 0x1cd   : > { %1084 = vrot.lane.b32.xlu1 %v4472_v8, %s4008_s15  ;;  %994 = vrot.lane.b32.xlu0 %v4472_v8, %s4009_s2  ;;  %v992_v10 = vmul.f32 0.35355338, %v4472_v8  ;;  %s4864_s15 = sld [smem:[#allocation49_spill]] }
 0x1d1   : > { %1162 = vrot.lane.b32.xlu1 %v4472_v8, %s4010_s14 }
 0x1d5   : > { %1160 = vrot.lane.b32.xlu1 %v992_v10, %s4011_s19 }
 0x1d9   : > { %1328 = vrot.lane.b32.xlu1 %v4472_v8, %s4012_s10 }
 0x23f   : > { %v1085_v11 = vpop.permute.xlu1 %1084  ;;  %v995_v12 = vpop.permute.xlu0 %994 }
 0x240   : > { %3313 = vmatpush3.xpose.msk.msra.mxu1 %vm996_vm2, %v995_v12  ;;  %v907_v12 = vld [vmem:[#allocation11 + $0x10] sm:$0xff] }
 0x241   : > { %3317 = vmatprep.subr.mxu1 %v4006_v0 }
 0x243   : > { %v1163_v13 = vpop.permute.xlu1 %1162  ;;  %3315 = vmatmul.mubr.msk.f32.vlgmr.msra.gmra.mxu1 %vm996_vm2, %v992_v10 }
 0x244   : > { %3318 = vmatpush3.msra.mxu1 %v1085_v11  ;;  %3319 = vmatprep.mubr.msk.f32.mxu1 %vm4007_vm0, %v4006_v0  ;;  %v908_v11 = vld [vmem:[#allocation11 + $0x18] sm:$0xff] }
 0x245   : > { %3322 = vmatprep.subr.mxu1 %v4006_v0 }
 0x247   : > { %v1161_v14 = vpop.permute.xlu1 %1160 }
 0x24b   : > { %v1329_v15 = vpop.permute.xlu1 %1328 }
 0x24c   : > { %3333 = vmatpush3.xpose.msk.msra.mxu0 %vm996_vm2, %v1329_v15 }
 0x24d   : > { %3342 = vmatprep.subr.mxu0 %v4006_v0 }
 0x303   : > { %v1068_v17 = vpop.f32.mrf.mxu1 }
 0x304   : > { %v1072_v18 = vsel %vm897_vm3, -1e+09, %v1068_v17 }
 0x305   : > { %v3316_v19 = vpop.f32.mrf.mxu1  ;;  %v1073_v20 = vsel %vm996_vm2, %v1072_v18, -inf }
 0x306   : > { %1074 = vmax.xlane.f32.xlu0 %v1073_v20 }
 0x31c   : > { %1494 = vrot.lane.b32.xlu0 %v4472_v8, %s4013_s20 }
 0x38f   : > { %v1075_v21 = vpop.xlane.xlu0 %1074 }
 0x390   : > { %v1076_v22 = vsub.f32 %v1072_v18, %v1075_v21 }
 0x392   : > { %v1077_v23 = vmul.f32 1.442695, %v1076_v22 }
 0x393   : > { %v1495_v28 = vpop.permute.xlu0 %1494 }
 0x394   : > { %3598 = vpow2.f32 %v1077_v23 }
 0x3a1   : > { %v3599_v24 = vpop.eup %3598 }
 0x3a2   : > { %v1079_v25 = vsel %vm996_vm2, %v3599_v24, 0.0 }
 0x3a3   : > { %1080 = vadd.xlane.f32.xlu1 %v1079_v25 }
 0x3b4   : > { %1326 = vrot.lane.b32.xlu1 %v992_v10, %s4014_s22 }
 0x3b8   : > { %1492 = vrot.lane.b32.xlu1 %v992_v10, %s4015_s13 }
 0x42c   : > { %v1081_v26 = vpop.xlane.xlu1 %1080 }
 0x42d   : > { %3600 = vrcp.f32 %v1081_v26 }
 0x430   : > { %v1327_v27 = vpop.permute.xlu1 %1326 }
 0x431   : > { %3335 = vmatmul.mubr.msk.f32.vlgmr.msra.gmra.mxu0 %vm996_vm2, %v1327_v27  ;;  %v1786_v27 = vld [vmem:[#allocation13 + $0x18] sm:$0xff] }
 0x432   : > { %3343 = vmatpush3.xpose.msk.msra.mxu0 %vm996_vm2, %v1495_v28  ;;  %3344 = vmatprep.mubr.msk.f32.mxu0 %vm4007_vm0, %v4006_v0  ;;  %v1785_v28 = vld [vmem:[#allocation13 + $0x10] sm:$0xff] }
 0x433   : > { %3352 = vmatprep.subr.mxu0 %v4006_v0 }
 0x434   : > { %v1493_v29 = vpop.permute.xlu1 %1492 }
 0x435   : > { %3345 = vmatmul.mubr.msk.f32.vlgmr.msra.gmra.mxu0 %vm996_vm2, %v1493_v29  ;;  %v3201_v29 = vld [vmem:[%s4756_s7] ss:$0 sm:$0xff] }
 0x436   : > { %3360 = vmatprep.mubr.msk.f32.mxu0 %vm4007_vm0, %v4006_v0  ;;  %3353 = vmatpush3.msra.mxu0 %v908_v11 }
 0x437   : > { %3354 = vmatprep.subr.mxu0 %v4006_v0 }
 0x438   : > { %3355 = vmatpush3.msra.mxu0 %v907_v12 }
 0x439   : > { %3356 = vmatprep.subr.mxu0 %v4006_v0 }
 0x43a   : > { %v3601_v30 = vpop.eup %3600 }
 0x43b   : > { %v1083_v31 = vmul.f32 %v3601_v30, %v3599_v24 }
 0x43d   : > { %3320 = vmatmul.mubr.msk.f32.vlgmr.msra.gmra.mxu1 %vm996_vm2, %v1083_v31 }
 0x43e   : > { %3323 = vmatpush3.xpose.msk.msra.mxu1 %vm996_vm2, %v1163_v13  ;;  %3324 = vmatprep.mubr.msk.f32.mxu1 %vm4007_vm0, %v4006_v0  ;;  %v906_v13 = vld [vmem:[#allocation11 + $0x8] sm:$0xff] }
 0x43f   : > { %3327 = vmatprep.subr.mxu1 %v4006_v0  ;;  %3357 = vmatpush3.msra.mxu0 %v906_v13 }
 0x440   : > { %3358 = vmatprep.subr.mxu0 %v4006_v0 }
 0x441   : > { %3325 = vmatmul.mubr.msk.f32.vlgmr.msra.gmra.mxu1 %vm996_vm2, %v1161_v14  ;;  %v905_v14 = vld [vmem:[#allocation11] sm:$0xff] }
 0x442   : > { %3329 = vmatprep.mubr.msk.f32.mxu1 %vm4007_vm0, %v4006_v0  ;;  %3359 = vmatpush3.msra.mxu0 %v905_v14 }
 0x443   : > { %3374 = vmatprep.subr.mxu0 %v4006_v0 }
 0x4f1   : > { %v1400_v32 = vpop.f32.mrf.mxu0 }
 0x4f2   : > { %v1404_v33 = vsel %vm897_vm3, -1e+09, %v1400_v32 }
 0x4f3   : > { %v3336_v34 = vpop.f32.mrf.mxu0  ;;  %v1405_v35 = vsel %vm996_vm2, %v1404_v33, -inf }
 0x4f4   : > { %1406 = vmax.xlane.f32.xlu0 %v1405_v35  ;;  %v1784_v35 = vld [vmem:[#allocation13 + $0x8] sm:$0xff] }
 0x4f5   : > { %v1566_v36 = vpop.f32.mrf.mxu0 }
 0x4f6   : > { %v1570_v44 = vsel %vm897_vm3, -1e+09, %v1566_v36  ;;  %v1783_v36 = vld [vmem:[#allocation13] sm:$0xff] }
 0x4f7   : > { %v3346_v37 = vpop.f32.mrf.mxu0  ;;  %v1571_v45 = vsel %vm996_vm2, %v1570_v44, -inf }
 0x4fd   : > { %v4518_v38 = vpop.f32.mrf.mxu1 }
 0x4ff   : > { %v3321_v39 = vpop.f32.mrf.mxu1 }
 0x501   : > { %v1234_v40 = vpop.f32.mrf.mxu1 }
 0x502   : > { %v1238_v41 = vsel %vm897_vm3, -1e+09, %v1234_v40 }
 0x503   : > { %v3326_v42 = vpop.f32.mrf.mxu1  ;;  %v1239_v43 = vsel %vm996_vm2, %v1238_v41, -inf }
 0x504   : > { %1240 = vmax.xlane.f32.xlu1 %v1239_v43 }
 0x508   : > { %1572 = vmax.xlane.f32.xlu1 %v1571_v45 }
 0x57d   : > { %v1407_v46 = vpop.xlane.xlu0 %1406 }
 0x57e   : > { %v1408_v47 = vsub.f32 %v1404_v33, %v1407_v46 }
 0x580   : > { %v1409_v48 = vmul.f32 1.442695, %v1408_v47 }
 0x582   : > { %3602 = vpow2.f32 %v1409_v48  ;;  %v894_v48 = vld [vmem:[%s767_s25] sm:$0xff] }
 0x58d   : > { %v1241_v49 = vpop.xlane.xlu1 %1240 }
 0x58e   : > { %v1242_v57 = vsub.f32 %v1238_v41, %v1241_v49 }
 0x58f   : > { %v3603_v50 = vpop.eup %3602 }
 0x590   : > { %v1411_v51 = vsel %vm996_vm2, %v3603_v50, 0.0  ;;  %v1243_v58 = vmul.f32 1.442695, %v1242_v57 }
 0x591   : > { %1412 = vadd.xlane.f32.xlu1 %v1411_v51  ;;  %v1573_v52 = vpop.xlane.xlu1 %1572 }
 0x592   : > { %v1574_v53 = vsub.f32 %v1570_v44, %v1573_v52  ;;  %v3205_v44 = vld [vmem:[%s4760_s11] ss:$0 sm:$0xff] }
 0x594   : > { %v1575_v54 = vmul.f32 1.442695, %v1574_v53  ;;  %v3204_v53 = vld [vmem:[%s4859_s26] ss:$0 sm:$0xff] }
 0x596   : > { %3604 = vpow2.f32 %v1575_v54 }
 0x597   : > { %3606 = vpow2.f32 %v1243_v58 }
 0x5a2   : > { %1250 = vrot.lane.b32.xlu1 %v4472_v8, %s4016_s27  ;;  %s4865_s27 = sld [smem:[#allocation31_spill]] }
 0x5a3   : > { %v3605_v55 = vpop.eup %3604 }
 0x5a4   : > { %v1577_v56 = vsel %vm996_vm2, %v3605_v55, 0.0  ;;  %v3607_v59 = vpop.eup %3606 }
 0x5a5   : > { %1578 = vadd.xlane.f32.xlu0 %v1577_v56  ;;  %v1245_v60 = vsel %vm996_vm2, %v3607_v59, 0.0 }
 0x5a8   : > { %p4869_p5 = scmp.ne.s32.totalorder %s4865_s27, 0 }
 0x5bb   : > { %1416 = vrot.lane.b32.xlu0 %v4472_v8, %s4017_s3  ;;  %s4858_s3 = sld [smem:[#allocation40_spill]] }
 0x5c1   : > { %v3203_v51 = vld [vmem:[%s4858_s3] ss:$0 sm:$0xff] }
 0x5c6   : > { %1246 = vadd.xlane.f32.xlu1 %v1245_v60 }
 0x5d7   : > { %1582 = vrot.lane.b32.xlu1 %v4472_v8, %s4018_s1 }
 0x61a   : > { %v1413_v61 = vpop.xlane.xlu1 %1412 }
 0x61e   : > { %v1251_v62 = vpop.permute.xlu1 %1250 }
 0x61f   : > { %3328 = vmatpush3.msra.mxu1 %v1251_v62 }
 0x620   : > { %3337 = vmatprep.subr.mxu1 %v4006_v0 }
 0x62e   : > { %v1579_v1 = vpop.xlane.xlu0 %1578 }
 0x632   : > { %v1417_v6 = vpop.permute.xlu0 %1416 }
 0x64f   : > { %v1247_v63 = vpop.xlane.xlu1 %1246 }
 0x650   : > { %3608 = vrcp.f32 %v1247_v63 }
 0x651   : > { %3610 = vrcp.f32 %v1413_v61 }
 0x652   : > { %3612 = vrcp.f32 %v1579_v1 }
 0x653   : > { %v1583_v9 = vpop.permute.xlu1 %1582 }
 0x65d   : > { %v3609_v2 = vpop.eup %3608 }
 0x65e   : > { %v1249_v3 = vmul.f32 %v3609_v2, %v3607_v59  ;;  %v3611_v4 = vpop.eup %3610 }
 0x65f   : > { %v1415_v7 = vmul.f32 %v3611_v4, %v3603_v50  ;;  %v3613_v8 = vpop.eup %3612 }
 0x660   : > { %3330 = vmatmul.mubr.msk.f32.vlgmr.msra.gmra.mxu1 %vm996_vm2, %v1249_v3  ;;  %v1581_v10 = vmul.f32 %v3613_v8, %v3605_v55  ;;  %v898_v8 = vld [vmem:[%s785_s12] sm:$0xff]  ;;  %s4867_s12 = sld [smem:[#allocation51_spill]] }
 0x661   : > { %3338 = vmatpush3.msra.mxu1 %v1417_v6  ;;  %3339 = vmatprep.mubr.msk.f32.mxu1 %vm4007_vm0, %v4006_v0  ;;  %vm899_vm6 = vcmp.ne.s32.totalorder %v898_v8, 0 }
 0x662   : > { %3347 = vmatprep.subr.mxu1 %v4006_v0 }
 0x664   : > { %3340 = vmatmul.mubr.msk.f32.vlgmr.msra.gmra.mxu1 %vm996_vm2, %v1415_v7 }
 0x665   : > { %3348 = vmatpush3.msra.mxu1 %v1583_v9  ;;  %3349 = vmatprep.mubr.msk.f32.mxu1 %vm4007_vm0, %v4006_v0 }
 0x666   : > { %3363 = vmatprep.subr.mxu1 %v4006_v0 }
 0x668   : > { %3350 = vmatmul.mubr.msk.f32.vlgmr.msra.gmra.mxu1 %vm996_vm2, %v1581_v10 }
 0x669   : > { %3371 = vmatprep.mubr.msk.f32.mxu1 %vm4007_vm0, %v4006_v0  ;;  %3364 = vmatpush3.msra.mxu1 %v1786_v27 }
 0x66a   : > { %3365 = vmatprep.subr.mxu1 %v4006_v0 }
 0x66b   : > { %3366 = vmatpush3.msra.mxu1 %v1785_v28 }
 0x66c   : > { %3367 = vmatprep.subr.mxu1 %v4006_v0 }
 0x66d   : > { %3368 = vmatpush3.msra.mxu1 %v1784_v35 }
 0x66e   : > { %3369 = vmatprep.subr.mxu1 %v4006_v0 }
 0x66f   : > { %3370 = vmatpush3.msra.mxu1 %v1783_v36 }
 0x670   : > { %3385 = vmatprep.subr.mxu1 %v4006_v0 }
 0x720   : > { %v1322_v15 = vpop.f32.mrf.mxu1 }
 0x721   : > { %1659 = vrot.lane.b32.xlu1 %v1322_v15, %s4019_s5 }
 0x722   : > { %v3331_v16 = vpop.f32.mrf.mxu1 }
 0x724   : > { %v1488_v17 = vpop.f32.mrf.mxu1 }
 0x725   : > { %1663 = vrot.lane.b32.xlu0 %v1488_v17, %s4020_s8 }
 0x726   : > { %v3341_v18 = vpop.f32.mrf.mxu1 }
 0x728   : > { %v1654_v19 = vpop.f32.mrf.mxu1 }
 0x729   : > { %1667 = vrot.lane.b32.xlu1 %v1654_v19, %s4021_s16 }
 0x72a   : > { %v3351_v20 = vpop.f32.mrf.mxu1 }
 0x72d   : > { %1882 = vrot.lane.b32.xlu1 %v1785_v28, %s4009_s2 }
 0x793   : > { %v1660_v21 = vpop.permute.xlu1 %1659 }
 0x794   : > { %v1670_v23 = vsel %vm996_vm2, %v4518_v38, %v1660_v21 }
 0x797   : > { %v1664_v22 = vpop.permute.xlu0 %1663 }
 0x798   : > { %v1672_v24 = vsel %vm1671_vm4, %v1670_v23, %v1664_v22 }
 0x79b   : > { %v1668_v25 = vpop.permute.xlu1 %1667 }
 0x79c   : > { %v1674_v26 = vsel %vm1673_vm5, %v1672_v24, %v1668_v25 }
 0x79d   : > { %3361 = vmatmul.mubr.msk.f32.vlgmr.msra.gmra.mxu0 %vm918_vm1, %v1674_v26 }
 0x79e   : > { %3382 = vmatprep.mubr.msk.f32.mxu0 %vm4007_vm0, %v4006_v0 }
 0x85d   : > { %v1750_v30 = vpop.f32.mrf.mxu0 }
 0x85e   : > { %v1751_v31 = vadd.f32 %v3201_v29, %v1750_v30 }
 0x85f   : > { %v3362_v32 = vpop.f32.mrf.mxu0 }
 0x860   : > { %v1754_v33 = vadd.f32 %v1751_v31, %v4461_v5  ;;  %v1883_v5 = vpop.permute.xlu1 %1882 }
 0x862   : > { %v1755_v34 = vsel %vm918_vm1, %v1754_v33, 0.0 }
 0x863   : > { %1756 = vadd.xlane.f32.xlu0 %v1755_v34 }
 0x879   : > { %1884 = vrot.lane.b32.xlu0 %v1786_v27, %s4009_s2 }
 0x87d   : > { %1880 = vrot.lane.b32.xlu0 %v1784_v35, %s4009_s2 }
 0x881   : > { %1890 = vrot.lane.b32.xlu0 %v3205_v44, %s4009_s2 }
 0x8ec   : > { %v1757_v37 = vpop.xlane.xlu0 %1756 }
 0x8ed   : > { %v1759_v38 = vmul.f32 0.03125, %v1757_v37 }
 0x8ef   : > { %v1760_v39 = vsub.f32 %v1754_v33, %v1759_v38 }
 0x8f0   : > { %v1885_v40 = vpop.permute.xlu0 %1884 }
 0x8f1   : > { %v1761_v41 = vmul.f32 %v1760_v39, %v1760_v39  ;;  %3375 = vmatpush3.msra.mxu0 %v1885_v40 }
 0x8f2   : > { %3376 = vmatprep.subr.mxu0 %v4006_v0 }
 0x8f3   : > { %v1762_v42 = vsel %vm918_vm1, %v1761_v41, 0.0  ;;  %3377 = vmatpush3.msra.mxu0 %v1883_v5 }
 0x8f4   : > { %1763 = vadd.xlane.f32.xlu1 %v1762_v42  ;;  %3378 = vmatprep.subr.mxu0 %v4006_v0  ;;  %v1881_v43 = vpop.permute.xlu0 %1880 }
 0x8f5   : > { %3379 = vmatpush3.msra.mxu0 %v1881_v43 }
 0x8f6   : > { %3380 = vmatprep.subr.mxu0 %v4006_v0 }
 0x8f8   : > { %v1891_v56 = vpop.permute.xlu0 %1890 }
 0x905   : > { %1878 = vrot.lane.b32.xlu1 %v1783_v36, %s4009_s2 }
 0x97d   : > { %v1764_v45 = vpop.xlane.xlu1 %1763 }
 0x97e   : > { %v1765_v46 = vmul.f32 0.03125, %v1764_v45 }
 0x980   : > { %v1766_v47 = vadd.f32 1e-05, %v1765_v46 }
 0x981   : > { %v1879_v49 = vpop.permute.xlu1 %1878 }
 0x982   : > { %3614 = vrsqrt.f32 %v1766_v47  ;;  %3381 = vmatpush3.msra.mxu0 %v1879_v49 }
 0x983   : > { %3383 = vmatmul.mubr.msk.f32.vlgmr.msra.gmra.mxu0 %vm918_vm1, %v894_v48  ;;  %3395 = vmatprep.subr.mxu0 %v4006_v0 }
 0x984   : > { %3397 = vmatprep.mubr.msk.f32.mxu0 %vm4007_vm0, %v4006_v0 }
 0x98f   : > { %v3615_v50 = vpop.eup %3614 }
 0x990   : > { %v1768_v52 = vmul.f32 %v3615_v50, %v1760_v39 }
 0x992   : > { %v1775_v54 = vmul.f32 %v3203_v51, %v1768_v52 }
 0x994   : > { %v4589_v55 = vadd.f32 %v3204_v53, %v1775_v54 }
 0x996   : > { %3372 = vmatmul.mubr.msk.f32.vlgmr.msra.gmra.mxu1 %vm918_vm1, %v4589_v55 }
 0x997   : > { %3387 = vmatprep.mubr.msk.f32.mxu1 %vm4007_vm0, %v4006_v0 }
 0xa43   : > { %v1962_v57 = vpop.f32.mrf.mxu0 }
 0xa44   : > { %v4595_v58 = vadd.f32 %v1962_v57, %v1891_v56 }
 0xa45   : > { %v3384_v59 = vpop.f32.mrf.mxu0 }
 0xa46   : > { %2133 = vrot.lane.b32.xlu1 %v4595_v58, %s4011_s19  ;;  %3386 = vmatpush3.xpose.msk.msra.mxu1 %vm996_vm2, %v4595_v58 }
 0xa47   : > { %3390 = vmatprep.subr.mxu1 %v4006_v0 }
 0xa4a   : > { %2299 = vrot.lane.b32.xlu1 %v4595_v58, %s4014_s22 }
 0xa4e   : > { %2465 = vrot.lane.b32.xlu1 %v4595_v58, %s4015_s13 }
 0xa56   : > { %v1870_v60 = vpop.f32.mrf.mxu1 }
 0xa57   : > { %v1871_v61 = vadd.f32 %v3205_v44, %v1870_v60 }
 0xa58   : > { %v3373_v62 = vpop.f32.mrf.mxu1 }
 0xa59   : > { %v1966_v63 = vmul.f32 0.35355338, %v1871_v61 }
 0xa5b   : > { %2131 = vrot.lane.b32.xlu0 %v1966_v63, %s4011_s19  ;;  %3388 = vmatmul.mubr.msk.f32.vlgmr.msra.gmra.mxu1 %vm996_vm2, %v1966_v63 }
 0xa5c   : > { %3392 = vmatprep.mubr.msk.f32.mxu1 %vm4007_vm0, %v4006_v0 }
 0xa5f   : > { %2297 = vrot.lane.b32.xlu0 %v1966_v63, %s4014_s22  ;;  %s4868_s22 = sld [smem:[#allocation52_spill]] }
 0xa63   : > { %2463 = vrot.lane.b32.xlu0 %v1966_v63, %s4015_s13  ;;  %v1791_v63 = vld [vmem:[#allocation14 + $0x18] sm:$0xff]  ;;  %s4862_s13 = sld [smem:[#allocation46_spill]] }
 0xab8   : > { %v2134_v1 = vpop.permute.xlu1 %2133 }
 0xab9   : > { %3396 = vmatpush3.xpose.msk.msra.mxu0 %vm996_vm2, %v2134_v1  ;;  %v1790_v1 = vld [vmem:[#allocation14 + $0x10] sm:$0xff] }
 0xaba   : > { %3405 = vmatprep.subr.mxu0 %v4006_v0 }
 0xabc   : > { %v2300_v2 = vpop.permute.xlu1 %2299 }
 0xac0   : > { %v2466_v6 = vpop.permute.xlu1 %2465 }
 0xacd   : > { %v2132_v3 = vpop.permute.xlu0 %2131 }
 0xace   : > { %3398 = vmatmul.mubr.msk.f32.vlgmr.msra.gmra.mxu0 %vm996_vm2, %v2132_v3  ;;  %v1788_v3 = vld [vmem:[#allocation14] sm:$0xff] }
 0xacf   : > { %3406 = vmatpush3.xpose.msk.msra.mxu0 %vm996_vm2, %v2300_v2  ;;  %3407 = vmatprep.mubr.msk.f32.mxu0 %vm4007_vm0, %v4006_v0  ;;  %v1789_v2 = vld [vmem:[#allocation14 + $0x8] sm:$0xff] }
 0xad0   : > { %3415 = vmatprep.subr.mxu0 %v4006_v0 }
 0xad1   : > { %v2298_v4 = vpop.permute.xlu0 %2297 }
 0xad2   : > { %3408 = vmatmul.mubr.msk.f32.vlgmr.msra.gmra.mxu0 %vm996_vm2, %v2298_v4 }
 0xad3   : > { %3416 = vmatpush3.xpose.msk.msra.mxu0 %vm996_vm2, %v2466_v6  ;;  %3417 = vmatprep.mubr.msk.f32.mxu0 %vm4007_vm0, %v4006_v0 }
 0xad4   : > { %3425 = vmatprep.subr.mxu0 %v4006_v0 }
 0xad5   : > { %v2464_v7 = vpop.permute.xlu0 %2463 }
 0xad6   : > { %3418 = vmatmul.mubr.msk.f32.vlgmr.msra.gmra.mxu0 %vm996_vm2, %v2464_v7 }
 0xad7   : > { %3433 = vmatprep.mubr.msk.f32.mxu0 %vm4007_vm0, %v4006_v0  ;;  %3426 = vmatpush3.msra.mxu0 %v1791_v63  ;;  %v3228_v63 = vld [vmem:[%s4866_s21] ss:$0 sm:$0xff] }
 0xad8   : > { %3427 = vmatprep.subr.mxu0 %v4006_v0 }
 0xad9   : > { %3428 = vmatpush3.msra.mxu0 %v1790_v1 }
 0xada   : > { %3429 = vmatprep.subr.mxu0 %v4006_v0 }
 0xadb   : > { %3430 = vmatpush3.msra.mxu0 %v1789_v2  ;;  %v3229_v2 = vld [vmem:[%s4867_s12] ss:$0 sm:$0xff] }
 0xadc   : > { %3431 = vmatprep.subr.mxu0 %v4006_v0 }
 0xadd   : > { %3432 = vmatpush3.msra.mxu0 %v1788_v3 }
 0xade   : > { %3447 = vmatprep.subr.mxu0 %v4006_v0 }
 0xb1b   : > { %v2039_v9 = vpop.f32.mrf.mxu1 }
 0xb1c   : > { %v2043_v10 = vsel %vm899_vm6, -1e+09, %v2039_v9 }
 0xb1d   : > { %v3389_v11 = vpop.f32.mrf.mxu1  ;;  %v2044_v12 = vsel %vm996_vm2, %v2043_v10, -inf }
 0xb1e   : > { %2045 = vmax.xlane.f32.xlu1 %v2044_v12 }
 0xb8e   : > { %v2205_v13 = vpop.f32.mrf.mxu0 }
 0xb8f   : > { %v2209_v14 = vsel %vm899_vm6, -1e+09, %v2205_v13 }
 0xb90   : > { %v3399_v15 = vpop.f32.mrf.mxu0  ;;  %v2210_v16 = vsel %vm996_vm2, %v2209_v14, -inf }
 0xb91   : > { %2211 = vmax.xlane.f32.xlu0 %v2210_v16 }
 0xb92   : > { %v2371_v17 = vpop.f32.mrf.mxu0 }
 0xb93   : > { %v2375_v18 = vsel %vm899_vm6, -1e+09, %v2371_v17 }
 0xb94   : > { %v3409_v19 = vpop.f32.mrf.mxu0  ;;  %v2376_v20 = vsel %vm996_vm2, %v2375_v18, -inf }
 0xb95   : > { %2377 = vmax.xlane.f32.xlu0 %v2376_v20 }
 0xb96   : > { %v2537_v21 = vpop.f32.mrf.mxu0 }
 0xb97   : > { %v2541_v22 = vsel %vm899_vm6, -1e+09, %v2537_v21 }
 0xb98   : > { %v3419_v23 = vpop.f32.mrf.mxu0  ;;  %v2542_v24 = vsel %vm996_vm2, %v2541_v22, -inf }
 0xb99   : > { %2543 = vmax.xlane.f32.xlu1 %v2542_v24 }
 0xba7   : > { %v2046_v25 = vpop.xlane.xlu1 %2045 }
 0xba8   : > { %v2047_v26 = vsub.f32 %v2043_v10, %v2046_v25 }
 0xbaa   : > { %v2048_v27 = vmul.f32 1.442695, %v2047_v26  ;;  %2221 = vrot.lane.b32.xlu1 %v4595_v58, %s4010_s14  ;;  %s893_s14 = scalar_lea.vmem [#allocation19], %s4415_s4 }
 0xbab   : > { %s2965_s19 = sshll.u32 %s893_s14, 4  ;;  %s2966_s19 = int_to_ptr.vmem [resolvable:$true] %s2965_s19 }
 0xbac   : > { %3616 = vpow2.f32 %v2048_v27 }
 0xbb9   : > { %v3617_v28 = vpop.eup %3616 }
 0xbba   : > { %v2050_v29 = vsel %vm996_vm2, %v3617_v28, 0.0 }
 0xbbb   : > { %2051 = vadd.xlane.f32.xlu0 %v2050_v29  ;;  %v2753_v29 = vld [vmem:[#allocation16 + $0x10] sm:$0xff] }
 0xbd1   : > { %2055 = vrot.lane.b32.xlu0 %v4595_v58, %s4009_s2  ;;  %s4860_s2 = sld [smem:[#allocation44_spill]] }
 0xbd7   : > { %v3220_v17 = vld [vmem:[%s4860_s2] ss:$0 sm:$0xff]  ;;  %s3231_s2 = sshll.u32 %s4159_s23, 7 }
 0xc1a   : > { %v2212_v30 = vpop.xlane.xlu0 %2211 }
 0xc1b   : > { %v2213_v31 = vsub.f32 %v2209_v14, %v2212_v30  ;;  %v2752_v30 = vld [vmem:[#allocation16 + $0x8] sm:$0xff] }
 0xc1d   : > { %v2214_v32 = vmul.f32 1.442695, %v2213_v31  ;;  %v2759_v31 = vld [vmem:[#allocation17 + $0x18] sm:$0xff] }
 0xc1e   : > { %v2378_v33 = vpop.xlane.xlu0 %2377 }
 0xc1f   : > { %3618 = vpow2.f32 %v2214_v32  ;;  %v2379_v34 = vsub.f32 %v2375_v18, %v2378_v33 }
 0xc21   : > { %v2380_v35 = vmul.f32 1.442695, %v2379_v34 }
 0xc22   : > { %v2544_v36 = vpop.xlane.xlu1 %2543 }
 0xc23   : > { %3620 = vpow2.f32 %v2380_v35  ;;  %v2545_v37 = vsub.f32 %v2541_v22, %v2544_v36 }
 0xc25   : > { %v2546_v38 = vmul.f32 1.442695, %v2545_v37 }
 0xc26   : > { %v2222_v48 = vpop.permute.xlu1 %2221 }
 0xc27   : > { %3622 = vpow2.f32 %v2546_v38  ;;  %v3223_v38 = vld [vmem:[%s4862_s13] ss:$0 sm:$0xff]  ;;  %s2963_s13 = scalar_lea.hbm %s4868_s22, %s3231_s2 }
 0xc2c   : > { %v3619_v39 = vpop.eup %3618 }
 0xc2d   : > { %v2216_v40 = vsel %vm996_vm2, %v3619_v39, 0.0 }
 0xc2e   : > { %2217 = vadd.xlane.f32.xlu1 %v2216_v40 }
 0xc30   : > { %v3621_v5 = vpop.eup %3620 }
 0xc31   : > { %v2382_v41 = vsel %vm996_vm2, %v3621_v5, 0.0 }
 0xc32   : > { %2383 = vadd.xlane.f32.xlu0 %v2382_v41  ;;  %v2757_v41 = vld [vmem:[#allocation17 + $0x8] sm:$0xff] }
 0xc34   : > { %v3623_v42 = vpop.eup %3622 }
 0xc35   : > { %v2548_v43 = vsel %vm996_vm2, %v3623_v42, 0.0 }
 0xc36   : > { %2549 = vadd.xlane.f32.xlu1 %v2548_v43 }
 0xc44   : > { %v2052_v44 = vpop.xlane.xlu0 %2051 }
 0xc45   : > { %3624 = vrcp.f32 %v2052_v44 }
 0xc47   : > { %2387 = vrot.lane.b32.xlu1 %v4595_v58, %s4012_s10  ;;  %s4861_s10 = sld [smem:[#allocation45_spill]] }
 0xc48   : > { %2553 = vrot.lane.b32.xlu0 %v4595_v58, %s4013_s20  ;;  %v2056_v45 = vpop.permute.xlu0 %2055 }
 0xc49   : > { %3391 = vmatpush3.msra.mxu1 %v2056_v45 }
 0xc4a   : > { %3400 = vmatprep.subr.mxu1 %v4006_v0 }
 0xc4d   : > { %v3222_v36 = vld [vmem:[%s4861_s10] ss:$0 sm:$0xff] }
 0xc52   : > { %v3625_v46 = vpop.eup %3624 }
 0xc53   : > { %v2054_v47 = vmul.f32 %v3625_v46, %v3617_v28  ;;  %v2754_v28 = vld [vmem:[#allocation16 + $0x18] sm:$0xff] }
 0xc55   : > { %3393 = vmatmul.mubr.msk.f32.vlgmr.msra.gmra.mxu1 %vm996_vm2, %v2054_v47 }
 0xc56   : > { %3401 = vmatpush3.msra.mxu1 %v2222_v48  ;;  %3402 = vmatprep.mubr.msk.f32.mxu1 %vm4007_vm0, %v4006_v0  ;;  %v3226_v48 = vld [vmem:[%s4864_s15] ss:$0 sm:$0xff] }
 0xc57   : > { %3410 = vmatprep.subr.mxu1 %v4006_v0 }
 0xcb7   : > { %v2218_v49 = vpop.xlane.xlu1 %2217 }
 0xcb8   : > { %3626 = vrcp.f32 %v2218_v49 }
 0xcbb   : > { %v2384_v50 = vpop.xlane.xlu0 %2383 }
 0xcbc   : > { %3628 = vrcp.f32 %v2384_v50 }
 0xcbf   : > { %v2550_v51 = vpop.xlane.xlu1 %2549  ;;  %v2554_v58 = vpop.permute.xlu0 %2553 }
 0xcc0   : > { %3630 = vrcp.f32 %v2550_v51 }
 0xcc3   : > { %v2388_v54 = vpop.permute.xlu1 %2387 }
 0xcc5   : > { %v3627_v52 = vpop.eup %3626 }
 0xcc6   : > { %v2220_v53 = vmul.f32 %v3627_v52, %v3619_v39 }
 0xcc8   : > { %3403 = vmatmul.mubr.msk.f32.vlgmr.msra.gmra.mxu1 %vm996_vm2, %v2220_v53 }
 0xcc9   : > { %v3629_v56 = vpop.eup %3628  ;;  %3411 = vmatpush3.msra.mxu1 %v2388_v54  ;;  %3412 = vmatprep.mubr.msk.f32.mxu1 %vm4007_vm0, %v4006_v0 }
 0xcca   : > { %3420 = vmatprep.subr.mxu1 %v4006_v0  ;;  %v2386_v57 = vmul.f32 %v3629_v56, %v3621_v5  ;;  %v2758_v5 = vld [vmem:[#allocation17 + $0x10] sm:$0xff] }
 0xccc   : > { %3413 = vmatmul.mubr.msk.f32.vlgmr.msra.gmra.mxu1 %vm996_vm2, %v2386_v57 }
 0xccd   : > { %v3631_v59 = vpop.eup %3630  ;;  %3421 = vmatpush3.msra.mxu1 %v2554_v58  ;;  %3422 = vmatprep.mubr.msk.f32.mxu1 %vm4007_vm0, %v4006_v0 }
 0xcce   : > { %v2552_v60 = vmul.f32 %v3631_v59, %v3623_v42  ;;  %3436 = vmatprep.subr.mxu1 %v4006_v0  ;;  %v2756_v42 = vld [vmem:[#allocation17] sm:$0xff] }
 0xcd0   : > { %3423 = vmatmul.mubr.msk.f32.vlgmr.msra.gmra.mxu1 %vm996_vm2, %v2552_v60 }
 0xcd1   : > { %3444 = vmatprep.mubr.msk.f32.mxu1 %vm4007_vm0, %v4006_v0  ;;  %3437 = vmatpush3.msra.mxu1 %v2754_v28 }
 0xcd2   : > { %3438 = vmatprep.subr.mxu1 %v4006_v0 }
 0xcd3   : > { %3439 = vmatpush3.msra.mxu1 %v2753_v29 }
 0xcd4   : > { %3440 = vmatprep.subr.mxu1 %v4006_v0 }
 0xcd5   : > { %3441 = vmatpush3.msra.mxu1 %v2752_v30 }
 0xcd6   : > { %3442 = vmatprep.subr.mxu1 %v4006_v0 }
 0xd15   : > { %v2127_v61 = vpop.f32.mrf.mxu1 }
 0xd17   : > { %v3394_v62 = vpop.f32.mrf.mxu1 }
 0xd88   : > { %v2293_v4 = vpop.f32.mrf.mxu1 }
 0xd89   : > { %2630 = vrot.lane.b32.xlu1 %v2293_v4, %s4019_s5  ;;  %s2952_s5 = scalar_lea.sflag [#allocation4], %s4412_s17 }
 0xd8a   : > { %v3404_v6 = vpop.f32.mrf.mxu1 }
 0xd8c   : > { %v2459_v7 = vpop.f32.mrf.mxu1 }
 0xd8d   : > { %2634 = vrot.lane.b32.xlu0 %v2459_v7, %s4020_s8  ;;  %s3904_s8 = scalar_lea.vmem %s2966_s19, 128 }
 0xd8e   : > { %v3414_v8 = vpop.f32.mrf.mxu1  ;;  %p3905_p2 = scmp.ne.s32.totalorder %s2966_s19, %s3904_s8 }
 0xd90   : > { %v2625_v9 = vpop.f32.mrf.mxu1  ;;  %p3906_p0 = pnand %p3905_p2, %p4869_p5 }
 0xd91   : > { %2638 = vrot.lane.b32.xlu1 %v2625_v9, %s4021_s16  ;;  %s4863_s16 = sld [smem:[#allocation48_spill]] }
 0xd92   : > { %v3424_v10 = vpop.f32.mrf.mxu1  ;;  %p3907_p6 = pneg %p3906_p0 }
 0xd97   : > { %v3224_v43 = vld [vmem:[%s4863_s16] ss:$0 sm:$0xff]  ;;  %s4022_s16 = smov [#allocation19]  }
 0xd98   : > { %s3908_s0 = sshll.u32 %s4022_s16, 4  ;;  %s3909_s0 = int_to_ptr.vmem [resolvable:$false] %s3908_s0 }
 0xd99   : > { %s3910_s23 = scalar_lea.vmem %s3909_s0, 256  ;;  %p3911_p7 = scmp.lt.s32.totalorder %s2966_s19, %s3909_s0 }
 0xd9a   : > { %p3912_p11 = scmp.lt.s32.totalorder %s3910_s23, %s3904_s8 }
 0xd9c   : > { %p3913_p12 = por %p3912_p11, %p3911_p7 }
 0xd9e   : > { %p3914_p8 = pnand %p3913_p12, %p3907_p6 }
 0xdfb   : > { %v2631_v11 = vpop.permute.xlu1 %2630 }
 0xdfc   : > { %v2641_v13 = vsel %vm996_vm2, %v2127_v61, %v2631_v11 }
 0xdff   : > { %v2635_v12 = vpop.permute.xlu0 %2634 }
 0xe00   : > { %v2642_v14 = vsel %vm1671_vm4, %v2641_v13, %v2635_v12 }
 0xe03   : > { %v2639_v15 = vpop.permute.xlu1 %2638 }
 0xe04   : > { %v2643_v16 = vsel %vm1673_vm5, %v2642_v14, %v2639_v15 }
 0xe05   : > { %3434 = vmatmul.mubr.msk.f32.vlgmr.msra.gmra.mxu0 %vm918_vm1, %v2643_v16 }
 0xe06   : > { %3455 = vmatprep.mubr.msk.f32.mxu0 %vm4007_vm0, %v4006_v0  ;;  %3448 = vmatpush3.msra.mxu0 %v2759_v31 }
 0xe07   : > { %3449 = vmatprep.subr.mxu0 %v4006_v0 }
 0xe08   : > { %3450 = vmatpush3.msra.mxu0 %v2758_v5 }
 0xe09   : > { %3451 = vmatprep.subr.mxu0 %v4006_v0 }
 0xe0a   : > { %3452 = vmatpush3.msra.mxu0 %v2757_v41 }
 0xe0b   : > { %3453 = vmatprep.subr.mxu0 %v4006_v0 }
 0xe0c   : > { %3454 = vmatpush3.msra.mxu0 %v2756_v42 }
 0xec5   : > { %v2719_v18 = vpop.f32.mrf.mxu0 }
 0xec6   : > { %v2720_v19 = vadd.f32 %v3220_v17, %v2719_v18 }
 0xec7   : > { %v3435_v20 = vpop.f32.mrf.mxu0 }
 0xec8   : > { %v2723_v21 = vadd.f32 %v2720_v19, %v4589_v55  ;;  %v2751_v55 = vld [vmem:[#allocation16] sm:$0xff] }
 0xec9   : > { %3443 = vmatpush3.msra.mxu1 %v2751_v55 }
 0xeca   : > { %v2724_v22 = vsel %vm918_vm1, %v2723_v21, 0.0 }
 0xecb   : > { %2725 = vadd.xlane.f32.xlu0 %v2724_v22 }
 0xf54   : > { %v2726_v23 = vpop.xlane.xlu0 %2725 }
 0xf55   : > { %v2727_v24 = vmul.f32 0.03125, %v2726_v23 }
 0xf57   : > { %v2728_v25 = vsub.f32 %v2723_v21, %v2727_v24 }
 0xf59   : > { %v2729_v26 = vmul.f32 %v2728_v25, %v2728_v25 }
 0xf5b   : > { %v2730_v27 = vsel %vm918_vm1, %v2729_v26, 0.0 }
 0xf5c   : > { %2731 = vadd.xlane.f32.xlu1 %v2730_v27 }
 0xfe5   : > { %v2732_v32 = vpop.xlane.xlu1 %2731 }
 0xfe6   : > { %v2733_v33 = vmul.f32 0.03125, %v2732_v32 }
 0xfe8   : > { %v2734_v34 = vadd.f32 1e-05, %v2733_v33 }
 0xfea   : > { %3632 = vrsqrt.f32 %v2734_v34 }
 0xff7   : > { %v3633_v35 = vpop.eup %3632 }
 0xff8   : > { %v2736_v37 = vmul.f32 %v3633_v35, %v2728_v25 }
 0xffa   : > { %v2743_v39 = vmul.f32 %v3222_v36, %v2736_v37 }
 0xffc   : > { %v2750_v40 = vadd.f32 %v3223_v38, %v2743_v39 }
 0xffe   : > { %3445 = vmatmul.mubr.msk.f32.vlgmr.msra.gmra.mxu1 %vm918_vm1, %v2750_v40 }
0x10be   : > { %v2838_v44 = vpop.f32.mrf.mxu1 }
0x10bf   : > { %v2839_v45 = vadd.f32 %v3224_v43, %v2838_v44 }
0x10c0   : > { %v3446_v46 = vpop.f32.mrf.mxu1 }
0x10c1   : > { %v2842_v47 = vmax.f32 %v2839_v45, 0.0 }
0x10c3   : > { %3456 = vmatmul.mubr.msk.f32.vlgmr.msra.gmra.mxu0 %vm918_vm1, %v2842_v47 }
0x1183   : > { %v2918_v49 = vpop.f32.mrf.mxu0 }
0x1184   : > { %v2919_v50 = vadd.f32 %v3226_v48, %v2918_v49 }
0x1185   : > { %v3457_v51 = vpop.f32.mrf.mxu0 }
0x1186   : > { %v2922_v52 = vadd.f32 %v2919_v50, %v2750_v40 }
0x1188   : > { %v2923_v0 = vsel %vm918_vm1, %v2922_v52, 0.0 }
0x1189   : > { %2924 = vadd.xlane.f32.xlu0 %v2923_v0 }
0x1212   : > { %v2925_v53 = vpop.xlane.xlu0 %2924 }
0x1213   : > { %v2926_v54 = vmul.f32 0.03125, %v2925_v53 }
0x1215   : > { %v2927_v56 = vsub.f32 %v2922_v52, %v2926_v54 }
0x1217   : > { %v2928_v57 = vmul.f32 %v2927_v56, %v2927_v56 }
0x1219   : > { %v2929_v58 = vsel %vm918_vm1, %v2928_v57, 0.0 }
0x121a   : > { %2930 = vadd.xlane.f32.xlu0 %v2929_v58 }
0x12a3   : > { %v2931_v59 = vpop.xlane.xlu0 %2930 }
0x12a4   : > { %v2932_v60 = vmul.f32 0.03125, %v2931_v59 }
0x12a6   : > { %v2933_v61 = vadd.f32 1e-05, %v2932_v60 }
0x12a8   : > { %3634 = vrsqrt.f32 %v2933_v61 }
0x12b5   : > { %v3635_v62 = vpop.eup %3634 }
0x12b6   : > { %v2935_v1 = vmul.f32 %v3635_v62, %v2927_v56 }
0x12b8   : > { %v2942_v3 = vmul.f32 %v3228_v63, %v2935_v1 }
0x12ba   : > { %v2949_v4 = vadd.f32 %v3229_v2, %v2942_v3 }
0x12bc   : > { %2950 = vst.msk [vmem:[%s893_s14] sm:$0xff] %vm918_vm1, %v2949_v4 }
0x12bd   : > { %3917 = shalt.err (!%p3914_p8)
}
0x12be   : > { %s3918_s4 = scalar_lea.hbm %s2963_s13, 128  ;;  %s3922_s15 = scalar_lea.hbm %s4868_s22, 256 }
0x12bf   : > { %p3919_p10 = scmp.ne.s32.totalorder %s2963_s13, %s3918_s4  ;;  %p3923_p1 = scmp.lt.s32.totalorder %s2963_s13, %s4868_s22 }
0x12c0   : > { %p3924_p3 = scmp.lt.s32.totalorder %s3922_s15, %s3918_s4 }
0x12c1   : > { %p3920_p4 = pnand %p3919_p10, %p4869_p5 }
0x12c2   : > { %p3925_p9 = por %p3924_p3, %p3923_p1 }
0x12c3   : > { %p3921_p13 = pneg %p3920_p4 }
0x12c5   : > { %p3926_p2 = pnand %p3925_p9, %p3921_p13 }
0x12c7   : > { %3929 = shalt.err (!%p3926_p2)
}
0x12c8   : > { %3490 = dma.vmem_to_hbm [thread:$0]  (%p4869_p5), %s2966_s19, 128, %s2963_s13, %s2952_s5  }
0x12c9 PF: > { %s4870_s21 = sld [smem:[#allocation28_spill]]  ;;  %p4873_p6 = scmp.ge.s32.totalorder %s3992_s30, 2 }
0x12ca   : > { %s4871_s26 = sld [smem:[#allocation32_spill]] }
0x12cf   : > { %s2977_s25 = sand.u32 1, %s4870_s21  }
0x12d0   : > { %p4872_p0 = scmp.ne.s32.totalorder %s4871_s26, 0  ;;  %s2978_s12 = scalar_lea.sflag [#allocation4], %s2977_s25 }
0x12d2   : > { %p3525_p7 = pnand %p4873_p6, %p4872_p0 }
0x12d4   : > { %p3526_p11 = pneg %p3525_p7 }
0x12d6   : > { %3975 = dma.done.wait (%p3526_p11), %s2978_s12, 128  }
0x12d7   : > { %3977 = vsyncadd (%p3526_p11), %s2978_s12, 4294967168  ;;  %s4874_s30 = sld [smem:[#allocation29_spill]]  ;;  %s4876_s3 = smov %s3984_s28 }
0x12d8   : > { %s4875_s2 = sld [smem:[#allocation30_spill]]  ;;  %s4877_s28 = smov %s3988_s29 }
0x12dd   : > { %p44_p12 = scmp.ge.s32.totalorder %s4874_s30, 4  }
0x12de   : > { %s4878_s29 = smov %s4875_s2 }
0x12df   :  { %46 = sbr.rel (!%p44_p12) target bundleno = 33 (0x21), region = 214 }
0x12e4   :  { %2983 = vsyncpa [#allocation3], 1 }
0x12e5   :  { %2985 = vsyncpa [#allocation3 + $0x1], 1 }
0x12e6   :  { %2986 = vsyncpa [#allocation6], 1 }
0x12e7   :  { %2988 = vsyncpa [#allocation6 + $0x1], 1 }
0x12e8   :  { %2989 = vsyncpa [#allocation9], 1 }
0x12e9   :  { %2991 = vsyncpa [#allocation9 + $0x1], 1 }
0x12ea   :  { %2992 = vsyncpa [#allocation12], 1 }
0x12eb   :  { %2993 = vsyncpa [#allocation15], 1 }
0x12ec   :  { %2994 = vsyncpa [#allocation18], 1 }
0x12ed   :  { %2995 = vsyncpa [#allocation4], 1 }
0x12ee   :  { %2997 = vsyncpa [#allocation4 + $0x1], 1 }

</bundles_post_ra>
